<compile_context>
chip_gen: v7x
topology: tpu7x:2x2x1
jax: 0.10.0
libtpu: 0.0.40
codegen_flags: <defaults>
</compile_context>

<pallas_src>
import math

import jax
import jax.numpy as jnp
from jax.experimental import pallas as pl
from jax.experimental.pallas import tpu as pltpu  # noqa: F401  (imported for TPU backend availability)

# ---------------------------- config (small, GPT2-like) ----------------------------
HIDDEN = 32          # config.hidden_size
NUM_HEADS = 4        # config.num_attention_heads
HEAD_DIM = HIDDEN // NUM_HEADS
INNER = 4 * HIDDEN   # config.n_inner is None -> 4 * hidden_size
SEQ = 8              # sequence length
ADP = 4              # adapter token count
BATCH = 2
LN_EPS = 1e-5        # config.layer_norm_epsilon
MASKED_BIAS = -10000.0


def _gelu_new(x):
    # GPT-2 "gelu_new": 0.5*x*(1+tanh(sqrt(2/pi)*(x+0.044715*x^3)))
    return 0.5 * x * (1.0 + jnp.tanh(math.sqrt(2.0 / math.pi) * (x + 0.044715 * x * x * x)))


def _layernorm(v, g, b, eps):
    mu = jnp.mean(v, axis=-1, keepdims=True)
    var = jnp.mean((v - mu) ** 2, axis=-1, keepdims=True)
    return (v - mu) * jax.lax.rsqrt(var + eps) * g + b


def _qk(a, b):
    # a @ b.T via dot_general (contract last dims of both) -- no explicit transpose op.
    return jax.lax.dot_general(a, b, (((1,), (1,)), ((), ())),
                               preferred_element_type=jnp.float32)


# ---------------------------------- Pallas kernel ----------------------------------
def gpt2_block_adapter_kernel(
    x_ref,        # (B*S, H)   hidden states, batch folded into rows
    adp_ref,      # (Sa, H)    adapter tokens (shared across the batch)
    mask_ref,     # (B*S, B*S) block-diagonal causal mask (1.0 = attend, 0.0 = masked)
    ln1g_ref,     # (1, H)
    ln1b_ref,     # (1, H)
    wh_ref,       # (4*NH, H, HD)  stacked per-head weights: [q(scaled), k, v, v_gated]
    bh_ref,       # (4*NH, 1, HD)  stacked per-head biases:  [q(scaled), k, v, v_gated]
    wproj_ref,    # (NH, HD, H)    per-head rows of c_proj weight
    bproj_ref,    # (1, H)
    ln2g_ref,     # (1, H)
    ln2b_ref,     # (1, H)
    wfc_ref,      # (H, INNER)
    bfc_ref,      # (1, INNER)
    wfc2_ref,     # (INNER, H)
    bfc2_ref,     # (1, H)
    out_ref,      # (B*S, H)
):
    x = x_ref[...]            # (BS, H)
    adp = adp_ref[...]        # (Sa, H)  (NOT layer-normed, matches the torch module)
    allowed = mask_ref[...] > 0.5

    bs = x.shape[0]

    # ---- ln_1 ----
    h = _layernorm(x, ln1g_ref[...], ln1b_ref[...], LN_EPS)

    # ---- per-head attention with merge-heads + c_proj folded into an accumulation ----
    attn_acc = jnp.zeros((bs, HIDDEN), jnp.float32)
    for hh in range(NUM_HEADS):
        wq = wh_ref[0 * NUM_HEADS + hh]     # (H, HD), already scaled by 1/sqrt(HD)
        bq = bh_ref[0 * NUM_HEADS + hh]     # (1, HD)
        wk = wh_ref[1 * NUM_HEADS + hh]
        bk = bh_ref[1 * NUM_HEADS + hh]
        wv = wh_ref[2 * NUM_HEADS + hh]
        bv = bh_ref[2 * NUM_HEADS + hh]
        wvg = wh_ref[3 * NUM_HEADS + hh]    # tanh(gate_h) folded in
        bvg = bh_ref[3 * NUM_HEADS + hh]

        q = jnp.dot(h, wq, preferred_element_type=jnp.float32) + bq      # (BS, HD)
        k = jnp.dot(h, wk, preferred_element_type=jnp.float32) + bk      # (BS, HD)
        v = jnp.dot(h, wv, preferred_element_type=jnp.float32) + bv      # (BS, HD)
        ka = jnp.dot(adp, wk, preferred_element_type=jnp.float32) + bk   # (Sa, HD)  once, shared
        vag = jnp.dot(adp, wvg, preferred_element_type=jnp.float32) + bvg  # (Sa, HD) gated

        # causal self-attention (block-diagonal across folded batch)
        s = _qk(q, k)                                   # (BS, BS)
        s = jnp.where(allowed, s, MASKED_BIAS)
        p = jax.nn.softmax(s, axis=-1)
        o = jnp.dot(p, v, preferred_element_type=jnp.float32)            # (BS, HD)

        # adapter attention (no mask; adapter keys are valid for every row)
        sa = _qk(q, ka)                                  # (BS, Sa)
        pa = jax.nn.softmax(sa, axis=-1)
        oa = jnp.dot(pa, vag, preferred_element_type=jnp.float32)        # (BS, HD)

        # merge-heads + c_proj folded: sum_h (o_h + gated_adapter_o_h) @ Wproj[h]
        attn_acc = attn_acc + jnp.dot(o + oa, wproj_ref[hh],
                                      preferred_element_type=jnp.float32)

    attn_out = attn_acc + bproj_ref[...]
    h_mid = attn_out + x                               # residual 1

    # ---- ln_2 + MLP (c_fc -> gelu_new -> c_proj) + residual ----
    h2 = _layernorm(h_mid, ln2g_ref[...], ln2b_ref[...], LN_EPS)
    ff = jnp.dot(h2, wfc_ref[...], preferred_element_type=jnp.float32) + bfc_ref[...]
    ff = _gelu_new(ff)
    ff = jnp.dot(ff, wfc2_ref[...], preferred_element_type=jnp.float32) + bfc2_ref[...]

    out_ref[...] = h_mid + ff


# ------------------------------------ wrapper ------------------------------------
def gpt2_block_w_adapter(x, adapter, params):
    B, S, H = x.shape
    assert H == HIDDEN and H % NUM_HEADS == 0

    if adapter.ndim == 3:
        # TODO(synk): distinct per-batch 3-D adapters would need per-batch adapter K/V;
        # this optimized kernel hoists the (shared) adapter projection out of the batch.
        adapter = adapter[0]
    Sa = adapter.shape[0]
    assert adapter.shape == (Sa, H)

    scale = 1.0 / math.sqrt(float(HEAD_DIM))          # scale_attn_weights=True
    gate_t = jnp.tanh(params["gate"]).reshape(NUM_HEADS)

    w_attn = params["w_attn"]                         # (H, 3H), Conv1D [in, out]
    b_attn = params["b_attn"]                         # (3H,)
    wq, wk, wv = w_attn[:, :H], w_attn[:, H:2 * H], w_attn[:, 2 * H:]
    bq, bk, bv = b_attn[:H], b_attn[H:2 * H], b_attn[2 * H:]

    def per_head_w(w):                                # (H, H) -> (NH, H, HD)
        return w.reshape(H, NUM_HEADS, HEAD_DIM).transpose(1, 0, 2)

    def per_head_b(b):                                # (H,) -> (NH, 1, HD)
        return b.reshape(NUM_HEADS, 1, HEAD_DIM)

    wq_h = per_head_w(wq) * scale                     # fold 1/sqrt(HD) into Q
    bq_h = per_head_b(bq) * scale
    wk_h, bk_h = per_head_w(wk), per_head_b(bk)
    wv_h, bv_h = per_head_w(wv), per_head_b(bv)
    wvg_h = wv_h * gate_t[:, None, None]              # fold tanh(gate) into adapter V
    bvg_h = bv_h * gate_t[:, None, None]

    wh = jnp.concatenate([wq_h, wk_h, wv_h, wvg_h], axis=0)   # (4*NH, H, HD)
    bh = jnp.concatenate([bq_h, bk_h, bv_h, bvg_h], axis=0)   # (4*NH, 1, HD)

    wproj_h = params["w_proj"].reshape(NUM_HEADS, HEAD_DIM, H)  # (NH, HD, H)

    # block-diagonal causal mask over the folded (B*S) rows, built once host-side
    causal = jnp.tril(jnp.ones((S, S), jnp.float32))
    mask = jnp.kron(jnp.eye(B, dtype=jnp.float32), causal)     # (B*S, B*S)

    row = lambda p: p.reshape(1, -1)

    out2d = pl.pallas_call(
        gpt2_block_adapter_kernel,
        out_shape=jax.ShapeDtypeStruct((B * S, H), jnp.float32),
    )(
        x.reshape(B * S, H), adapter, mask,
        row(params["ln1_g"]), row(params["ln1_b"]),
        wh, bh, wproj_h, row(params["b_proj"]),
        row(params["ln2_g"]), row(params["ln2_b"]),
        params["w_fc"], row(params["b_fc"]),
        params["w_fc2"], row(params["b_fc2"]),
    )
    return out2d.reshape(B, S, H)


# --------------------------- pure-JAX reference (for check) ---------------------------
def reference(x, adapter, params):
    B = x.shape[0]
    if adapter.ndim == 2:
        adapter = jnp.broadcast_to(adapter[None], (B,) + adapter.shape)

    def ln(v, g, b):
        mu = v.mean(-1, keepdims=True)
        var = ((v - mu) ** 2).mean(-1, keepdims=True)
        return (v - mu) / jnp.sqrt(var + LN_EPS) * g + b

    def split_heads(t):
        B_, S_, _ = t.shape
        return t.reshape(B_, S_, NUM_HEADS, HEAD_DIM).transpose(0, 2, 1, 3)

    h = ln(x, params["ln1_g"], params["ln1_b"])
    qkv = h @ params["w_attn"] + params["b_attn"]
    qkv_a = adapter @ params["w_attn"] + params["b_attn"]
    q, k, v = jnp.split(qkv, 3, axis=-1)
    _, k_a, v_a = jnp.split(qkv_a, 3, axis=-1)
    q, k, v = split_heads(q), split_heads(k), split_heads(v)
    k_a, v_a = split_heads(k_a), split_heads(v_a)

    scale = 1.0 / math.sqrt(float(HEAD_DIM))
    S = x.shape[1]
    causal = jnp.tril(jnp.ones((S, S), dtype=bool))

    w = jnp.einsum("bhqd,bhkd->bhqk", q, k) * scale
    w = jnp.where(causal, w, MASKED_BIAS)
    w = jax.nn.softmax(w, axis=-1)
    o_i = jnp.einsum("bhqk,bhkd->bhqd", w, v)

    wa = jnp.einsum("bhqd,bhkd->bhqk", q, k_a) * scale
    wa = jax.nn.softmax(wa, axis=-1)
    o_a = jnp.einsum("bhqk,bhkd->bhqd", wa, v_a)

    gate_t = jnp.tanh(params["gate"]).reshape(1, NUM_HEADS, 1, 1)
    o = o_i + o_a * gate_t
    o = o.transpose(0, 2, 1, 3).reshape(x.shape)
    o = o @ params["w_proj"] + params["b_proj"]
    h_mid = o + x

    h2 = ln(h_mid, params["ln2_g"], params["ln2_b"])
    ff = h2 @ params["w_fc"] + params["b_fc"]
    ff = _gelu_new(ff)
    ff = ff @ params["w_fc2"] + params["b_fc2"]
    return h_mid + ff


# ------------------------------------- main -------------------------------------
if __name__ == "__main__":
    key = jax.random.PRNGKey(0)
    ks = jax.random.split(key, 12)

    x = jax.random.normal(ks[0], (BATCH, SEQ, HIDDEN), dtype=jnp.float32)
    adapter = jax.random.normal(ks[1], (ADP, HIDDEN), dtype=jnp.float32)  # 2D adapter path

    init = lambda k, shape: (0.02 * jax.random.normal(k, shape)).astype(jnp.float32)
    params = {
        "ln1_g": jnp.ones((HIDDEN,), jnp.float32),
        "ln1_b": jnp.zeros((HIDDEN,), jnp.float32),
        "w_attn": init(ks[2], (HIDDEN, 3 * HIDDEN)),
        "b_attn": jnp.zeros((3 * HIDDEN,), jnp.float32),
        "w_proj": init(ks[3], (HIDDEN, HIDDEN)),
        "b_proj": jnp.zeros((HIDDEN,), jnp.float32),
        # gate is zeros in __init__; small random values exercise the adapter path
        "gate": init(ks[4], (1, NUM_HEADS, 1, 1)),
        "ln2_g": jnp.ones((HIDDEN,), jnp.float32),
        "ln2_b": jnp.zeros((HIDDEN,), jnp.float32),
        "w_fc": init(ks[5], (HIDDEN, INNER)),
        "b_fc": jnp.zeros((INNER,), jnp.float32),
        "w_fc2": init(ks[6], (INNER, HIDDEN)),
        "b_fc2": jnp.zeros((HIDDEN,), jnp.float32),
    }

    out = gpt2_block_w_adapter(x, adapter, params)
    out = jax.block_until_ready(out)

    ref = reference(x, adapter, params)
    assert jnp.allclose(out, ref, atol=1e-4, rtol=1e-4), "mismatch vs reference"

    print("KERNEL_OK")
</pallas_src>

<mosaic_0001>
module attributes {stable_mosaic.version = 11 : i64} {
  func.func @gpt2_block_adapter_kernel(%arg0: memref<16x32xf32, #tpu.memory_space<vmem>>, %arg1: memref<4x32xf32, #tpu.memory_space<vmem>>, %arg2: memref<16x16xf32, #tpu.memory_space<vmem>>, %arg3: memref<1x32xf32, #tpu.memory_space<vmem>>, %arg4: memref<1x32xf32, #tpu.memory_space<vmem>>, %arg5: memref<16x32x8xf32, #tpu.memory_space<vmem>>, %arg6: memref<16x1x8xf32, #tpu.memory_space<vmem>>, %arg7: memref<4x8x32xf32, #tpu.memory_space<vmem>>, %arg8: memref<1x32xf32, #tpu.memory_space<vmem>>, %arg9: memref<1x32xf32, #tpu.memory_space<vmem>>, %arg10: memref<1x32xf32, #tpu.memory_space<vmem>>, %arg11: memref<32x128xf32, #tpu.memory_space<vmem>>, %arg12: memref<1x128xf32, #tpu.memory_space<vmem>>, %arg13: memref<128x32xf32, #tpu.memory_space<vmem>>, %arg14: memref<1x32xf32, #tpu.memory_space<vmem>>, %arg15: memref<16x32xf32, #tpu.memory_space<vmem>>) attributes {dimension_semantics = [], scalar_prefetch = 0 : i64, scratch_operands = 0 : i64, tpu.core_type = #tpu.core_type<tc>} {
    %c0 = arith.constant 0 : index
    %c0_0 = arith.constant 0 : index
    %0 = vector.load %arg0[%c0, %c0_0] : memref<16x32xf32, #tpu.memory_space<vmem>>, vector<16x32xf32>
    %c0_1 = arith.constant 0 : index
    %c0_2 = arith.constant 0 : index
    %1 = vector.load %arg1[%c0_1, %c0_2] : memref<4x32xf32, #tpu.memory_space<vmem>>, vector<4x32xf32>
    %c0_3 = arith.constant 0 : index
    %c0_4 = arith.constant 0 : index
    %2 = vector.load %arg2[%c0_3, %c0_4] : memref<16x16xf32, #tpu.memory_space<vmem>>, vector<16x16xf32>
    %cst = arith.constant 5.000000e-01 : f32
    %3 = vector.broadcast %cst : f32 to vector<16x16xf32>
    %4 = arith.cmpf ogt, %2, %3 : vector<16x16xf32>
    %c0_5 = arith.constant 0 : index
    %c0_6 = arith.constant 0 : index
    %5 = vector.load %arg3[%c0_5, %c0_6] : memref<1x32xf32, #tpu.memory_space<vmem>>, vector<1x32xf32>
    %c0_7 = arith.constant 0 : index
    %c0_8 = arith.constant 0 : index
    %6 = vector.load %arg4[%c0_7, %c0_8] : memref<1x32xf32, #tpu.memory_space<vmem>>, vector<1x32xf32>
    %cst_9 = arith.constant dense<0.000000e+00> : vector<16xf32>
    %7 = vector.multi_reduction <add>, %0, %cst_9 [1] : vector<16x32xf32> to vector<16xf32>
    %8 = vector.shape_cast %7 : vector<16xf32> to vector<16x1xf32>
    %cst_10 = arith.constant 3.200000e+01 : f32
    %9 = vector.broadcast %cst_10 : f32 to vector<16x1xf32>
    %10 = arith.divf %8, %9 : vector<16x1xf32>
    %11 = vector.broadcast %10 : vector<16x1xf32> to vector<16x32xf32>
    %12 = arith.subf %0, %11 : vector<16x32xf32>
    %13 = arith.mulf %12, %12 : vector<16x32xf32>
    %cst_11 = arith.constant dense<0.000000e+00> : vector<16xf32>
    %14 = vector.multi_reduction <add>, %13, %cst_11 [1] : vector<16x32xf32> to vector<16xf32>
    %15 = vector.shape_cast %14 : vector<16xf32> to vector<16x1xf32>
    %cst_12 = arith.constant 3.200000e+01 : f32
    %16 = vector.broadcast %cst_12 : f32 to vector<16x1xf32>
    %17 = arith.divf %15, %16 : vector<16x1xf32>
    %18 = vector.broadcast %10 : vector<16x1xf32> to vector<16x32xf32>
    %19 = arith.subf %0, %18 : vector<16x32xf32>
    %cst_13 = arith.constant 9.99999974E-6 : f32
    %20 = vector.broadcast %cst_13 : f32 to vector<16x1xf32>
    %21 = arith.addf %17, %20 : vector<16x1xf32>
    %22 = math.rsqrt %21 : vector<16x1xf32>
    %23 = vector.broadcast %22 : vector<16x1xf32> to vector<16x32xf32>
    %24 = arith.mulf %19, %23 : vector<16x32xf32>
    %25 = vector.broadcast %5 : vector<1x32xf32> to vector<16x32xf32>
    %26 = arith.mulf %24, %25 : vector<16x32xf32>
    %27 = vector.broadcast %6 : vector<1x32xf32> to vector<16x32xf32>
    %28 = arith.addf %26, %27 : vector<16x32xf32>
    %cst_14 = arith.constant 0.000000e+00 : f32
    %29 = vector.broadcast %cst_14 : f32 to vector<16x32xf32>
    %c0_15 = arith.constant 0 : index
    %c0_16 = arith.constant 0 : index
    %c0_17 = arith.constant 0 : index
    %30 = vector.load %arg5[%c0_15, %c0_16, %c0_17] : memref<16x32x8xf32, #tpu.memory_space<vmem>>, vector<1x32x8xf32>
    %31 = vector.shape_cast %30 : vector<1x32x8xf32> to vector<32x8xf32>
    %c0_18 = arith.constant 0 : index
    %c0_19 = arith.constant 0 : index
    %c0_20 = arith.constant 0 : index
    %32 = vector.load %arg6[%c0_18, %c0_19, %c0_20] : memref<16x1x8xf32, #tpu.memory_space<vmem>>, vector<1x1x8xf32>
    %33 = vector.shape_cast %32 : vector<1x1x8xf32> to vector<1x8xf32>
    %c4 = arith.constant 4 : index
    %c0_21 = arith.constant 0 : index
    %c0_22 = arith.constant 0 : index
    %34 = vector.load %arg5[%c4, %c0_21, %c0_22] : memref<16x32x8xf32, #tpu.memory_space<vmem>>, vector<1x32x8xf32>
    %35 = vector.shape_cast %34 : vector<1x32x8xf32> to vector<32x8xf32>
    %c4_23 = arith.constant 4 : index
    %c0_24 = arith.constant 0 : index
    %c0_25 = arith.constant 0 : index
    %36 = vector.load %arg6[%c4_23, %c0_24, %c0_25] : memref<16x1x8xf32, #tpu.memory_space<vmem>>, vector<1x1x8xf32>
    %37 = vector.shape_cast %36 : vector<1x1x8xf32> to vector<1x8xf32>
    %c8 = arith.constant 8 : index
    %c0_26 = arith.constant 0 : index
    %c0_27 = arith.constant 0 : index
    %38 = vector.load %arg5[%c8, %c0_26, %c0_27] : memref<16x32x8xf32, #tpu.memory_space<vmem>>, vector<1x32x8xf32>
    %39 = vector.shape_cast %38 : vector<1x32x8xf32> to vector<32x8xf32>
    %c8_28 = arith.constant 8 : index
    %c0_29 = arith.constant 0 : index
    %c0_30 = arith.constant 0 : index
    %40 = vector.load %arg6[%c8_28, %c0_29, %c0_30] : memref<16x1x8xf32, #tpu.memory_space<vmem>>, vector<1x1x8xf32>
    %41 = vector.shape_cast %40 : vector<1x1x8xf32> to vector<1x8xf32>
    %c12 = arith.constant 12 : index
    %c0_31 = arith.constant 0 : index
    %c0_32 = arith.constant 0 : index
    %42 = vector.load %arg5[%c12, %c0_31, %c0_32] : memref<16x32x8xf32, #tpu.memory_space<vmem>>, vector<1x32x8xf32>
    %43 = vector.shape_cast %42 : vector<1x32x8xf32> to vector<32x8xf32>
    %c12_33 = arith.constant 12 : index
    %c0_34 = arith.constant 0 : index
    %c0_35 = arith.constant 0 : index
    %44 = vector.load %arg6[%c12_33, %c0_34, %c0_35] : memref<16x1x8xf32, #tpu.memory_space<vmem>>, vector<1x1x8xf32>
    %45 = vector.shape_cast %44 : vector<1x1x8xf32> to vector<1x8xf32>
    %cst_36 = arith.constant dense<0.000000e+00> : vector<16x8xf32>
    %46 = tpu.matmul %28, %31, %cst_36 {dimension_numbers = #tpu.dot_dimension_numbers<[1], [0], [0], [1], [0, 0, 1, 1], [], []>} : vector<16x32xf32>, vector<32x8xf32>, vector<16x8xf32> -> vector<16x8xf32>
    %47 = vector.broadcast %33 : vector<1x8xf32> to vector<16x8xf32>
    %48 = arith.addf %46, %47 : vector<16x8xf32>
    %cst_37 = arith.constant dense<0.000000e+00> : vector<16x8xf32>
    %49 = tpu.matmul %28, %35, %cst_37 {dimension_numbers = #tpu.dot_dimension_numbers<[1], [0], [0], [1], [0, 0, 1, 1], [], []>} : vector<16x32xf32>, vector<32x8xf32>, vector<16x8xf32> -> vector<16x8xf32>
    %50 = vector.broadcast %37 : vector<1x8xf32> to vector<16x8xf32>
    %51 = arith.addf %49, %50 : vector<16x8xf32>
    %cst_38 = arith.constant dense<0.000000e+00> : vector<16x8xf32>
    %52 = tpu.matmul %28, %39, %cst_38 {dimension_numbers = #tpu.dot_dimension_numbers<[1], [0], [0], [1], [0, 0, 1, 1], [], []>} : vector<16x32xf32>, vector<32x8xf32>, vector<16x8xf32> -> vector<16x8xf32>
    %53 = vector.broadcast %41 : vector<1x8xf32> to vector<16x8xf32>
    %54 = arith.addf %52, %53 : vector<16x8xf32>
    %cst_39 = arith.constant dense<0.000000e+00> : vector<4x8xf32>
    %55 = tpu.matmul %1, %35, %cst_39 {dimension_numbers = #tpu.dot_dimension_numbers<[1], [0], [0], [1], [0, 0, 1, 1], [], []>} : vector<4x32xf32>, vector<32x8xf32>, vector<4x8xf32> -> vector<4x8xf32>
    %56 = vector.broadcast %37 : vector<1x8xf32> to vector<4x8xf32>
    %57 = arith.addf %55, %56 : vector<4x8xf32>
    %cst_40 = arith.constant dense<0.000000e+00> : vector<4x8xf32>
    %58 = tpu.matmul %1, %43, %cst_40 {dimension_numbers = #tpu.dot_dimension_numbers<[1], [0], [0], [1], [0, 0, 1, 1], [], []>} : vector<4x32xf32>, vector<32x8xf32>, vector<4x8xf32> -> vector<4x8xf32>
    %59 = vector.broadcast %45 : vector<1x8xf32> to vector<4x8xf32>
    %60 = arith.addf %58, %59 : vector<4x8xf32>
    %cst_41 = arith.constant dense<0.000000e+00> : vector<16x16xf32>
    %61 = tpu.matmul %48, %51, %cst_41 {dimension_numbers = #tpu.dot_dimension_numbers<[1], [1], [0], [0], [0, 0, 1, 0], [], []>} : vector<16x8xf32>, vector<16x8xf32>, vector<16x16xf32> -> vector<16x16xf32>
    %cst_42 = arith.constant -1.000000e+04 : f32
    %62 = vector.broadcast %cst_42 : f32 to vector<16x16xf32>
    %63 = arith.select %4, %61, %62 : vector<16x16xi1>, vector<16x16xf32>
    %cst_43 = arith.constant dense<0xFF800000> : vector<16xf32>
    %64 = vector.multi_reduction <maximumf>, %63, %cst_43 [1] : vector<16x16xf32> to vector<16xf32>
    %cst_44 = arith.constant 0xFF800000 : f32
    %65 = vector.broadcast %cst_44 : f32 to vector<16xf32>
    %66 = arith.maximumf %65, %64 : vector<16xf32>
    %67 = vector.shape_cast %66 : vector<16xf32> to vector<16x1xf32>
    %68 = vector.broadcast %67 : vector<16x1xf32> to vector<16x16xf32>
    %69 = arith.subf %63, %68 : vector<16x16xf32>
    %70 = math.exp %69 : vector<16x16xf32>
    %cst_45 = arith.constant dense<0.000000e+00> : vector<16xf32>
    %71 = vector.multi_reduction <add>, %70, %cst_45 [1] : vector<16x16xf32> to vector<16xf32>
    %72 = vector.shape_cast %71 : vector<16xf32> to vector<16x1xf32>
    %73 = vector.broadcast %72 : vector<16x1xf32> to vector<16x16xf32>
    %74 = arith.divf %70, %73 : vector<16x16xf32>
    %cst_46 = arith.constant dense<0.000000e+00> : vector<16x8xf32>
    %75 = tpu.matmul %74, %54, %cst_46 {dimension_numbers = #tpu.dot_dimension_numbers<[1], [0], [0], [1], [0, 0, 1, 1], [], []>} : vector<16x16xf32>, vector<16x8xf32>, vector<16x8xf32> -> vector<16x8xf32>
    %cst_47 = arith.constant dense<0.000000e+00> : vector<16x4xf32>
    %76 = tpu.matmul %48, %57, %cst_47 {dimension_numbers = #tpu.dot_dimension_numbers<[1], [1], [0], [0], [0, 0, 1, 0], [], []>} : vector<16x8xf32>, vector<4x8xf32>, vector<16x4xf32> -> vector<16x4xf32>
    %cst_48 = arith.constant dense<0xFF800000> : vector<16xf32>
    %77 = vector.multi_reduction <maximumf>, %76, %cst_48 [1] : vector<16x4xf32> to vector<16xf32>
    %cst_49 = arith.constant 0xFF800000 : f32
    %78 = vector.broadcast %cst_49 : f32 to vector<16xf32>
    %79 = arith.maximumf %78, %77 : vector<16xf32>
    %80 = vector.shape_cast %79 : vector<16xf32> to vector<16x1xf32>
    %81 = vector.broadcast %80 : vector<16x1xf32> to vector<16x4xf32>
    %82 = arith.subf %76, %81 : vector<16x4xf32>
    %83 = math.exp %82 : vector<16x4xf32>
    %cst_50 = arith.constant dense<0.000000e+00> : vector<16xf32>
    %84 = vector.multi_reduction <add>, %83, %cst_50 [1] : vector<16x4xf32> to vector<16xf32>
    %85 = vector.shape_cast %84 : vector<16xf32> to vector<16x1xf32>
    %86 = vector.broadcast %85 : vector<16x1xf32> to vector<16x4xf32>
    %87 = arith.divf %83, %86 : vector<16x4xf32>
    %cst_51 = arith.constant dense<0.000000e+00> : vector<16x8xf32>
    %88 = tpu.matmul %87, %60, %cst_51 {dimension_numbers = #tpu.dot_dimension_numbers<[1], [0], [0], [1], [0, 0, 1, 1], [], []>} : vector<16x4xf32>, vector<4x8xf32>, vector<16x8xf32> -> vector<16x8xf32>
    %89 = arith.addf %75, %88 : vector<16x8xf32>
    %c0_52 = arith.constant 0 : index
    %c0_53 = arith.constant 0 : index
    %c0_54 = arith.constant 0 : index
    %90 = vector.load %arg7[%c0_52, %c0_53, %c0_54] : memref<4x8x32xf32, #tpu.memory_space<vmem>>, vector<1x8x32xf32>
    %91 = vector.shape_cast %90 : vector<1x8x32xf32> to vector<8x32xf32>
    %cst_55 = arith.constant dense<0.000000e+00> : vector<16x32xf32>
    %92 = tpu.matmul %89, %91, %cst_55 {dimension_numbers = #tpu.dot_dimension_numbers<[1], [0], [0], [1], [0, 0, 1, 1], [], []>} : vector<16x8xf32>, vector<8x32xf32>, vector<16x32xf32> -> vector<16x32xf32>
    %93 = arith.addf %29, %92 : vector<16x32xf32>
    %c1 = arith.constant 1 : index
    %c0_56 = arith.constant 0 : index
    %c0_57 = arith.constant 0 : index
    %94 = vector.load %arg5[%c1, %c0_56, %c0_57] : memref<16x32x8xf32, #tpu.memory_space<vmem>>, vector<1x32x8xf32>
    %95 = vector.shape_cast %94 : vector<1x32x8xf32> to vector<32x8xf32>
    %c1_58 = arith.constant 1 : index
    %c0_59 = arith.constant 0 : index
    %c0_60 = arith.constant 0 : index
    %96 = vector.load %arg6[%c1_58, %c0_59, %c0_60] : memref<16x1x8xf32, #tpu.memory_space<vmem>>, vector<1x1x8xf32>
    %97 = vector.shape_cast %96 : vector<1x1x8xf32> to vector<1x8xf32>
    %c5 = arith.constant 5 : index
    %c0_61 = arith.constant 0 : index
    %c0_62 = arith.constant 0 : index
    %98 = vector.load %arg5[%c5, %c0_61, %c0_62] : memref<16x32x8xf32, #tpu.memory_space<vmem>>, vector<1x32x8xf32>
    %99 = vector.shape_cast %98 : vector<1x32x8xf32> to vector<32x8xf32>
    %c5_63 = arith.constant 5 : index
    %c0_64 = arith.constant 0 : index
    %c0_65 = arith.constant 0 : index
    %100 = vector.load %arg6[%c5_63, %c0_64, %c0_65] : memref<16x1x8xf32, #tpu.memory_space<vmem>>, vector<1x1x8xf32>
    %101 = vector.shape_cast %100 : vector<1x1x8xf32> to vector<1x8xf32>
    %c9 = arith.constant 9 : index
    %c0_66 = arith.constant 0 : index
    %c0_67 = arith.constant 0 : index
    %102 = vector.load %arg5[%c9, %c0_66, %c0_67] : memref<16x32x8xf32, #tpu.memory_space<vmem>>, vector<1x32x8xf32>
    %103 = vector.shape_cast %102 : vector<1x32x8xf32> to vector<32x8xf32>
    %c9_68 = arith.constant 9 : index
    %c0_69 = arith.constant 0 : index
    %c0_70 = arith.constant 0 : index
    %104 = vector.load %arg6[%c9_68, %c0_69, %c0_70] : memref<16x1x8xf32, #tpu.memory_space<vmem>>, vector<1x1x8xf32>
    %105 = vector.shape_cast %104 : vector<1x1x8xf32> to vector<1x8xf32>
    %c13 = arith.constant 13 : index
    %c0_71 = arith.constant 0 : index
    %c0_72 = arith.constant 0 : index
    %106 = vector.load %arg5[%c13, %c0_71, %c0_72] : memref<16x32x8xf32, #tpu.memory_space<vmem>>, vector<1x32x8xf32>
    %107 = vector.shape_cast %106 : vector<1x32x8xf32> to vector<32x8xf32>
    %c13_73 = arith.constant 13 : index
    %c0_74 = arith.constant 0 : index
    %c0_75 = arith.constant 0 : index
    %108 = vector.load %arg6[%c13_73, %c0_74, %c0_75] : memref<16x1x8xf32, #tpu.memory_space<vmem>>, vector<1x1x8xf32>
    %109 = vector.shape_cast %108 : vector<1x1x8xf32> to vector<1x8xf32>
    %cst_76 = arith.constant dense<0.000000e+00> : vector<16x8xf32>
    %110 = tpu.matmul %28, %95, %cst_76 {dimension_numbers = #tpu.dot_dimension_numbers<[1], [0], [0], [1], [0, 0, 1, 1], [], []>} : vector<16x32xf32>, vector<32x8xf32>, vector<16x8xf32> -> vector<16x8xf32>
    %111 = vector.broadcast %97 : vector<1x8xf32> to vector<16x8xf32>
    %112 = arith.addf %110, %111 : vector<16x8xf32>
    %cst_77 = arith.constant dense<0.000000e+00> : vector<16x8xf32>
    %113 = tpu.matmul %28, %99, %cst_77 {dimension_numbers = #tpu.dot_dimension_numbers<[1], [0], [0], [1], [0, 0, 1, 1], [], []>} : vector<16x32xf32>, vector<32x8xf32>, vector<16x8xf32> -> vector<16x8xf32>
    %114 = vector.broadcast %101 : vector<1x8xf32> to vector<16x8xf32>
    %115 = arith.addf %113, %114 : vector<16x8xf32>
    %cst_78 = arith.constant dense<0.000000e+00> : vector<16x8xf32>
    %116 = tpu.matmul %28, %103, %cst_78 {dimension_numbers = #tpu.dot_dimension_numbers<[1], [0], [0], [1], [0, 0, 1, 1], [], []>} : vector<16x32xf32>, vector<32x8xf32>, vector<16x8xf32> -> vector<16x8xf32>
    %117 = vector.broadcast %105 : vector<1x8xf32> to vector<16x8xf32>
    %118 = arith.addf %116, %117 : vector<16x8xf32>
    %cst_79 = arith.constant dense<0.000000e+00> : vector<4x8xf32>
    %119 = tpu.matmul %1, %99, %cst_79 {dimension_numbers = #tpu.dot_dimension_numbers<[1], [0], [0], [1], [0, 0, 1, 1], [], []>} : vector<4x32xf32>, vector<32x8xf32>, vector<4x8xf32> -> vector<4x8xf32>
    %120 = vector.broadcast %101 : vector<1x8xf32> to vector<4x8xf32>
    %121 = arith.addf %119, %120 : vector<4x8xf32>
    %cst_80 = arith.constant dense<0.000000e+00> : vector<4x8xf32>
    %122 = tpu.matmul %1, %107, %cst_80 {dimension_numbers = #tpu.dot_dimension_numbers<[1], [0], [0], [1], [0, 0, 1, 1], [], []>} : vector<4x32xf32>, vector<32x8xf32>, vector<4x8xf32> -> vector<4x8xf32>
    %123 = vector.broadcast %109 : vector<1x8xf32> to vector<4x8xf32>
    %124 = arith.addf %122, %123 : vector<4x8xf32>
    %cst_81 = arith.constant dense<0.000000e+00> : vector<16x16xf32>
    %125 = tpu.matmul %112, %115, %cst_81 {dimension_numbers = #tpu.dot_dimension_numbers<[1], [1], [0], [0], [0, 0, 1, 0], [], []>} : vector<16x8xf32>, vector<16x8xf32>, vector<16x16xf32> -> vector<16x16xf32>
    %cst_82 = arith.constant -1.000000e+04 : f32
    %126 = vector.broadcast %cst_82 : f32 to vector<16x16xf32>
    %127 = arith.select %4, %125, %126 : vector<16x16xi1>, vector<16x16xf32>
    %cst_83 = arith.constant dense<0xFF800000> : vector<16xf32>
    %128 = vector.multi_reduction <maximumf>, %127, %cst_83 [1] : vector<16x16xf32> to vector<16xf32>
    %cst_84 = arith.constant 0xFF800000 : f32
    %129 = vector.broadcast %cst_84 : f32 to vector<16xf32>
    %130 = arith.maximumf %129, %128 : vector<16xf32>
    %131 = vector.shape_cast %130 : vector<16xf32> to vector<16x1xf32>
    %132 = vector.broadcast %131 : vector<16x1xf32> to vector<16x16xf32>
    %133 = arith.subf %127, %132 : vector<16x16xf32>
    %134 = math.exp %133 : vector<16x16xf32>
    %cst_85 = arith.constant dense<0.000000e+00> : vector<16xf32>
    %135 = vector.multi_reduction <add>, %134, %cst_85 [1] : vector<16x16xf32> to vector<16xf32>
    %136 = vector.shape_cast %135 : vector<16xf32> to vector<16x1xf32>
    %137 = vector.broadcast %136 : vector<16x1xf32> to vector<16x16xf32>
    %138 = arith.divf %134, %137 : vector<16x16xf32>
    %cst_86 = arith.constant dense<0.000000e+00> : vector<16x8xf32>
    %139 = tpu.matmul %138, %118, %cst_86 {dimension_numbers = #tpu.dot_dimension_numbers<[1], [0], [0], [1], [0, 0, 1, 1], [], []>} : vector<16x16xf32>, vector<16x8xf32>, vector<16x8xf32> -> vector<16x8xf32>
    %cst_87 = arith.constant dense<0.000000e+00> : vector<16x4xf32>
    %140 = tpu.matmul %112, %121, %cst_87 {dimension_numbers = #tpu.dot_dimension_numbers<[1], [1], [0], [0], [0, 0, 1, 0], [], []>} : vector<16x8xf32>, vector<4x8xf32>, vector<16x4xf32> -> vector<16x4xf32>
    %cst_88 = arith.constant dense<0xFF800000> : vector<16xf32>
    %141 = vector.multi_reduction <maximumf>, %140, %cst_88 [1] : vector<16x4xf32> to vector<16xf32>
    %cst_89 = arith.constant 0xFF800000 : f32
    %142 = vector.broadcast %cst_89 : f32 to vector<16xf32>
    %143 = arith.maximumf %142, %141 : vector<16xf32>
    %144 = vector.shape_cast %143 : vector<16xf32> to vector<16x1xf32>
    %145 = vector.broadcast %144 : vector<16x1xf32> to vector<16x4xf32>
    %146 = arith.subf %140, %145 : vector<16x4xf32>
    %147 = math.exp %146 : vector<16x4xf32>
    %cst_90 = arith.constant dense<0.000000e+00> : vector<16xf32>
    %148 = vector.multi_reduction <add>, %147, %cst_90 [1] : vector<16x4xf32> to vector<16xf32>
    %149 = vector.shape_cast %148 : vector<16xf32> to vector<16x1xf32>
    %150 = vector.broadcast %149 : vector<16x1xf32> to vector<16x4xf32>
    %151 = arith.divf %147, %150 : vector<16x4xf32>
    %cst_91 = arith.constant dense<0.000000e+00> : vector<16x8xf32>
    %152 = tpu.matmul %151, %124, %cst_91 {dimension_numbers = #tpu.dot_dimension_numbers<[1], [0], [0], [1], [0, 0, 1, 1], [], []>} : vector<16x4xf32>, vector<4x8xf32>, vector<16x8xf32> -> vector<16x8xf32>
    %153 = arith.addf %139, %152 : vector<16x8xf32>
    %c1_92 = arith.constant 1 : index
    %c0_93 = arith.constant 0 : index
    %c0_94 = arith.constant 0 : index
    %154 = vector.load %arg7[%c1_92, %c0_93, %c0_94] : memref<4x8x32xf32, #tpu.memory_space<vmem>>, vector<1x8x32xf32>
    %155 = vector.shape_cast %154 : vector<1x8x32xf32> to vector<8x32xf32>
    %cst_95 = arith.constant dense<0.000000e+00> : vector<16x32xf32>
    %156 = tpu.matmul %153, %155, %cst_95 {dimension_numbers = #tpu.dot_dimension_numbers<[1], [0], [0], [1], [0, 0, 1, 1], [], []>} : vector<16x8xf32>, vector<8x32xf32>, vector<16x32xf32> -> vector<16x32xf32>
    %157 = arith.addf %93, %156 : vector<16x32xf32>
    %c2 = arith.constant 2 : index
    %c0_96 = arith.constant 0 : index
    %c0_97 = arith.constant 0 : index
    %158 = vector.load %arg5[%c2, %c0_96, %c0_97] : memref<16x32x8xf32, #tpu.memory_space<vmem>>, vector<1x32x8xf32>
    %159 = vector.shape_cast %158 : vector<1x32x8xf32> to vector<32x8xf32>
    %c2_98 = arith.constant 2 : index
    %c0_99 = arith.constant 0 : index
    %c0_100 = arith.constant 0 : index
    %160 = vector.load %arg6[%c2_98, %c0_99, %c0_100] : memref<16x1x8xf32, #tpu.memory_space<vmem>>, vector<1x1x8xf32>
    %161 = vector.shape_cast %160 : vector<1x1x8xf32> to vector<1x8xf32>
    %c6 = arith.constant 6 : index
    %c0_101 = arith.constant 0 : index
    %c0_102 = arith.constant 0 : index
    %162 = vector.load %arg5[%c6, %c0_101, %c0_102] : memref<16x32x8xf32, #tpu.memory_space<vmem>>, vector<1x32x8xf32>
    %163 = vector.shape_cast %162 : vector<1x32x8xf32> to vector<32x8xf32>
    %c6_103 = arith.constant 6 : index
    %c0_104 = arith.constant 0 : index
    %c0_105 = arith.constant 0 : index
    %164 = vector.load %arg6[%c6_103, %c0_104, %c0_105] : memref<16x1x8xf32, #tpu.memory_space<vmem>>, vector<1x1x8xf32>
    %165 = vector.shape_cast %164 : vector<1x1x8xf32> to vector<1x8xf32>
    %c10 = arith.constant 10 : index
    %c0_106 = arith.constant 0 : index
    %c0_107 = arith.constant 0 : index
    %166 = vector.load %arg5[%c10, %c0_106, %c0_107] : memref<16x32x8xf32, #tpu.memory_space<vmem>>, vector<1x32x8xf32>
    %167 = vector.shape_cast %166 : vector<1x32x8xf32> to vector<32x8xf32>
    %c10_108 = arith.constant 10 : index
    %c0_109 = arith.constant 0 : index
    %c0_110 = arith.constant 0 : index
    %168 = vector.load %arg6[%c10_108, %c0_109, %c0_110] : memref<16x1x8xf32, #tpu.memory_space<vmem>>, vector<1x1x8xf32>
    %169 = vector.shape_cast %168 : vector<1x1x8xf32> to vector<1x8xf32>
    %c14 = arith.constant 14 : index
    %c0_111 = arith.constant 0 : index
    %c0_112 = arith.constant 0 : index
    %170 = vector.load %arg5[%c14, %c0_111, %c0_112] : memref<16x32x8xf32, #tpu.memory_space<vmem>>, vector<1x32x8xf32>
    %171 = vector.shape_cast %170 : vector<1x32x8xf32> to vector<32x8xf32>
    %c14_113 = arith.constant 14 : index
    %c0_114 = arith.constant 0 : index
    %c0_115 = arith.constant 0 : index
    %172 = vector.load %arg6[%c14_113, %c0_114, %c0_115] : memref<16x1x8xf32, #tpu.memory_space<vmem>>, vector<1x1x8xf32>
    %173 = vector.shape_cast %172 : vector<1x1x8xf32> to vector<1x8xf32>
    %cst_116 = arith.constant dense<0.000000e+00> : vector<16x8xf32>
    %174 = tpu.matmul %28, %159, %cst_116 {dimension_numbers = #tpu.dot_dimension_numbers<[1], [0], [0], [1], [0, 0, 1, 1], [], []>} : vector<16x32xf32>, vector<32x8xf32>, vector<16x8xf32> -> vector<16x8xf32>
    %175 = vector.broadcast %161 : vector<1x8xf32> to vector<16x8xf32>
    %176 = arith.addf %174, %175 : vector<16x8xf32>
    %cst_117 = arith.constant dense<0.000000e+00> : vector<16x8xf32>
    %177 = tpu.matmul %28, %163, %cst_117 {dimension_numbers = #tpu.dot_dimension_numbers<[1], [0], [0], [1], [0, 0, 1, 1], [], []>} : vector<16x32xf32>, vector<32x8xf32>, vector<16x8xf32> -> vector<16x8xf32>
    %178 = vector.broadcast %165 : vector<1x8xf32> to vector<16x8xf32>
    %179 = arith.addf %177, %178 : vector<16x8xf32>
    %cst_118 = arith.constant dense<0.000000e+00> : vector<16x8xf32>
    %180 = tpu.matmul %28, %167, %cst_118 {dimension_numbers = #tpu.dot_dimension_numbers<[1], [0], [0], [1], [0, 0, 1, 1], [], []>} : vector<16x32xf32>, vector<32x8xf32>, vector<16x8xf32> -> vector<16x8xf32>
    %181 = vector.broadcast %169 : vector<1x8xf32> to vector<16x8xf32>
    %182 = arith.addf %180, %181 : vector<16x8xf32>
    %cst_119 = arith.constant dense<0.000000e+00> : vector<4x8xf32>
    %183 = tpu.matmul %1, %163, %cst_119 {dimension_numbers = #tpu.dot_dimension_numbers<[1], [0], [0], [1], [0, 0, 1, 1], [], []>} : vector<4x32xf32>, vector<32x8xf32>, vector<4x8xf32> -> vector<4x8xf32>
    %184 = vector.broadcast %165 : vector<1x8xf32> to vector<4x8xf32>
    %185 = arith.addf %183, %184 : vector<4x8xf32>
    %cst_120 = arith.constant dense<0.000000e+00> : vector<4x8xf32>
    %186 = tpu.matmul %1, %171, %cst_120 {dimension_numbers = #tpu.dot_dimension_numbers<[1], [0], [0], [1], [0, 0, 1, 1], [], []>} : vector<4x32xf32>, vector<32x8xf32>, vector<4x8xf32> -> vector<4x8xf32>
    %187 = vector.broadcast %173 : vector<1x8xf32> to vector<4x8xf32>
    %188 = arith.addf %186, %187 : vector<4x8xf32>
    %cst_121 = arith.constant dense<0.000000e+00> : vector<16x16xf32>
    %189 = tpu.matmul %176, %179, %cst_121 {dimension_numbers = #tpu.dot_dimension_numbers<[1], [1], [0], [0], [0, 0, 1, 0], [], []>} : vector<16x8xf32>, vector<16x8xf32>, vector<16x16xf32> -> vector<16x16xf32>
    %cst_122 = arith.constant -1.000000e+04 : f32
    %190 = vector.broadcast %cst_122 : f32 to vector<16x16xf32>
    %191 = arith.select %4, %189, %190 : vector<16x16xi1>, vector<16x16xf32>
    %cst_123 = arith.constant dense<0xFF800000> : vector<16xf32>
    %192 = vector.multi_reduction <maximumf>, %191, %cst_123 [1] : vector<16x16xf32> to vector<16xf32>
    %cst_124 = arith.constant 0xFF800000 : f32
    %193 = vector.broadcast %cst_124 : f32 to vector<16xf32>
    %194 = arith.maximumf %193, %192 : vector<16xf32>
    %195 = vector.shape_cast %194 : vector<16xf32> to vector<16x1xf32>
    %196 = vector.broadcast %195 : vector<16x1xf32> to vector<16x16xf32>
    %197 = arith.subf %191, %196 : vector<16x16xf32>
    %198 = math.exp %197 : vector<16x16xf32>
    %cst_125 = arith.constant dense<0.000000e+00> : vector<16xf32>
    %199 = vector.multi_reduction <add>, %198, %cst_125 [1] : vector<16x16xf32> to vector<16xf32>
    %200 = vector.shape_cast %199 : vector<16xf32> to vector<16x1xf32>
    %201 = vector.broadcast %200 : vector<16x1xf32> to vector<16x16xf32>
    %202 = arith.divf %198, %201 : vector<16x16xf32>
    %cst_126 = arith.constant dense<0.000000e+00> : vector<16x8xf32>
    %203 = tpu.matmul %202, %182, %cst_126 {dimension_numbers = #tpu.dot_dimension_numbers<[1], [0], [0], [1], [0, 0, 1, 1], [], []>} : vector<16x16xf32>, vector<16x8xf32>, vector<16x8xf32> -> vector<16x8xf32>
    %cst_127 = arith.constant dense<0.000000e+00> : vector<16x4xf32>
    %204 = tpu.matmul %176, %185, %cst_127 {dimension_numbers = #tpu.dot_dimension_numbers<[1], [1], [0], [0], [0, 0, 1, 0], [], []>} : vector<16x8xf32>, vector<4x8xf32>, vector<16x4xf32> -> vector<16x4xf32>
    %cst_128 = arith.constant dense<0xFF800000> : vector<16xf32>
    %205 = vector.multi_reduction <maximumf>, %204, %cst_128 [1] : vector<16x4xf32> to vector<16xf32>
    %cst_129 = arith.constant 0xFF800000 : f32
    %206 = vector.broadcast %cst_129 : f32 to vector<16xf32>
    %207 = arith.maximumf %206, %205 : vector<16xf32>
    %208 = vector.shape_cast %207 : vector<16xf32> to vector<16x1xf32>
    %209 = vector.broadcast %208 : vector<16x1xf32> to vector<16x4xf32>
    %210 = arith.subf %204, %209 : vector<16x4xf32>
    %211 = math.exp %210 : vector<16x4xf32>
    %cst_130 = arith.constant dense<0.000000e+00> : vector<16xf32>
    %212 = vector.multi_reduction <add>, %211, %cst_130 [1] : vector<16x4xf32> to vector<16xf32>
    %213 = vector.shape_cast %212 : vector<16xf32> to vector<16x1xf32>
    %214 = vector.broadcast %213 : vector<16x1xf32> to vector<16x4xf32>
    %215 = arith.divf %211, %214 : vector<16x4xf32>
    %cst_131 = arith.constant dense<0.000000e+00> : vector<16x8xf32>
    %216 = tpu.matmul %215, %188, %cst_131 {dimension_numbers = #tpu.dot_dimension_numbers<[1], [0], [0], [1], [0, 0, 1, 1], [], []>} : vector<16x4xf32>, vector<4x8xf32>, vector<16x8xf32> -> vector<16x8xf32>
    %217 = arith.addf %203, %216 : vector<16x8xf32>
    %c2_132 = arith.constant 2 : index
    %c0_133 = arith.constant 0 : index
    %c0_134 = arith.constant 0 : index
    %218 = vector.load %arg7[%c2_132, %c0_133, %c0_134] : memref<4x8x32xf32, #tpu.memory_space<vmem>>, vector<1x8x32xf32>
    %219 = vector.shape_cast %218 : vector<1x8x32xf32> to vector<8x32xf32>
    %cst_135 = arith.constant dense<0.000000e+00> : vector<16x32xf32>
    %220 = tpu.matmul %217, %219, %cst_135 {dimension_numbers = #tpu.dot_dimension_numbers<[1], [0], [0], [1], [0, 0, 1, 1], [], []>} : vector<16x8xf32>, vector<8x32xf32>, vector<16x32xf32> -> vector<16x32xf32>
    %221 = arith.addf %157, %220 : vector<16x32xf32>
    %c3 = arith.constant 3 : index
    %c0_136 = arith.constant 0 : index
    %c0_137 = arith.constant 0 : index
    %222 = vector.load %arg5[%c3, %c0_136, %c0_137] : memref<16x32x8xf32, #tpu.memory_space<vmem>>, vector<1x32x8xf32>
    %223 = vector.shape_cast %222 : vector<1x32x8xf32> to vector<32x8xf32>
    %c3_138 = arith.constant 3 : index
    %c0_139 = arith.constant 0 : index
    %c0_140 = arith.constant 0 : index
    %224 = vector.load %arg6[%c3_138, %c0_139, %c0_140] : memref<16x1x8xf32, #tpu.memory_space<vmem>>, vector<1x1x8xf32>
    %225 = vector.shape_cast %224 : vector<1x1x8xf32> to vector<1x8xf32>
    %c7 = arith.constant 7 : index
    %c0_141 = arith.constant 0 : index
    %c0_142 = arith.constant 0 : index
    %226 = vector.load %arg5[%c7, %c0_141, %c0_142] : memref<16x32x8xf32, #tpu.memory_space<vmem>>, vector<1x32x8xf32>
    %227 = vector.shape_cast %226 : vector<1x32x8xf32> to vector<32x8xf32>
    %c7_143 = arith.constant 7 : index
    %c0_144 = arith.constant 0 : index
    %c0_145 = arith.constant 0 : index
    %228 = vector.load %arg6[%c7_143, %c0_144, %c0_145] : memref<16x1x8xf32, #tpu.memory_space<vmem>>, vector<1x1x8xf32>
    %229 = vector.shape_cast %228 : vector<1x1x8xf32> to vector<1x8xf32>
    %c11 = arith.constant 11 : index
    %c0_146 = arith.constant 0 : index
    %c0_147 = arith.constant 0 : index
    %230 = vector.load %arg5[%c11, %c0_146, %c0_147] : memref<16x32x8xf32, #tpu.memory_space<vmem>>, vector<1x32x8xf32>
    %231 = vector.shape_cast %230 : vector<1x32x8xf32> to vector<32x8xf32>
    %c11_148 = arith.constant 11 : index
    %c0_149 = arith.constant 0 : index
    %c0_150 = arith.constant 0 : index
    %232 = vector.load %arg6[%c11_148, %c0_149, %c0_150] : memref<16x1x8xf32, #tpu.memory_space<vmem>>, vector<1x1x8xf32>
    %233 = vector.shape_cast %232 : vector<1x1x8xf32> to vector<1x8xf32>
    %c15 = arith.constant 15 : index
    %c0_151 = arith.constant 0 : index
    %c0_152 = arith.constant 0 : index
    %234 = vector.load %arg5[%c15, %c0_151, %c0_152] : memref<16x32x8xf32, #tpu.memory_space<vmem>>, vector<1x32x8xf32>
    %235 = vector.shape_cast %234 : vector<1x32x8xf32> to vector<32x8xf32>
    %c15_153 = arith.constant 15 : index
    %c0_154 = arith.constant 0 : index
    %c0_155 = arith.constant 0 : index
    %236 = vector.load %arg6[%c15_153, %c0_154, %c0_155] : memref<16x1x8xf32, #tpu.memory_space<vmem>>, vector<1x1x8xf32>
    %237 = vector.shape_cast %236 : vector<1x1x8xf32> to vector<1x8xf32>
    %cst_156 = arith.constant dense<0.000000e+00> : vector<16x8xf32>
    %238 = tpu.matmul %28, %223, %cst_156 {dimension_numbers = #tpu.dot_dimension_numbers<[1], [0], [0], [1], [0, 0, 1, 1], [], []>} : vector<16x32xf32>, vector<32x8xf32>, vector<16x8xf32> -> vector<16x8xf32>
    %239 = vector.broadcast %225 : vector<1x8xf32> to vector<16x8xf32>
    %240 = arith.addf %238, %239 : vector<16x8xf32>
    %cst_157 = arith.constant dense<0.000000e+00> : vector<16x8xf32>
    %241 = tpu.matmul %28, %227, %cst_157 {dimension_numbers = #tpu.dot_dimension_numbers<[1], [0], [0], [1], [0, 0, 1, 1], [], []>} : vector<16x32xf32>, vector<32x8xf32>, vector<16x8xf32> -> vector<16x8xf32>
    %242 = vector.broadcast %229 : vector<1x8xf32> to vector<16x8xf32>
    %243 = arith.addf %241, %242 : vector<16x8xf32>
    %cst_158 = arith.constant dense<0.000000e+00> : vector<16x8xf32>
    %244 = tpu.matmul %28, %231, %cst_158 {dimension_numbers = #tpu.dot_dimension_numbers<[1], [0], [0], [1], [0, 0, 1, 1], [], []>} : vector<16x32xf32>, vector<32x8xf32>, vector<16x8xf32> -> vector<16x8xf32>
    %245 = vector.broadcast %233 : vector<1x8xf32> to vector<16x8xf32>
    %246 = arith.addf %244, %245 : vector<16x8xf32>
    %cst_159 = arith.constant dense<0.000000e+00> : vector<4x8xf32>
    %247 = tpu.matmul %1, %227, %cst_159 {dimension_numbers = #tpu.dot_dimension_numbers<[1], [0], [0], [1], [0, 0, 1, 1], [], []>} : vector<4x32xf32>, vector<32x8xf32>, vector<4x8xf32> -> vector<4x8xf32>
    %248 = vector.broadcast %229 : vector<1x8xf32> to vector<4x8xf32>
    %249 = arith.addf %247, %248 : vector<4x8xf32>
    %cst_160 = arith.constant dense<0.000000e+00> : vector<4x8xf32>
    %250 = tpu.matmul %1, %235, %cst_160 {dimension_numbers = #tpu.dot_dimension_numbers<[1], [0], [0], [1], [0, 0, 1, 1], [], []>} : vector<4x32xf32>, vector<32x8xf32>, vector<4x8xf32> -> vector<4x8xf32>
    %251 = vector.broadcast %237 : vector<1x8xf32> to vector<4x8xf32>
    %252 = arith.addf %250, %251 : vector<4x8xf32>
    %cst_161 = arith.constant dense<0.000000e+00> : vector<16x16xf32>
    %253 = tpu.matmul %240, %243, %cst_161 {dimension_numbers = #tpu.dot_dimension_numbers<[1], [1], [0], [0], [0, 0, 1, 0], [], []>} : vector<16x8xf32>, vector<16x8xf32>, vector<16x16xf32> -> vector<16x16xf32>
    %cst_162 = arith.constant -1.000000e+04 : f32
    %254 = vector.broadcast %cst_162 : f32 to vector<16x16xf32>
    %255 = arith.select %4, %253, %254 : vector<16x16xi1>, vector<16x16xf32>
    %cst_163 = arith.constant dense<0xFF800000> : vector<16xf32>
    %256 = vector.multi_reduction <maximumf>, %255, %cst_163 [1] : vector<16x16xf32> to vector<16xf32>
    %cst_164 = arith.constant 0xFF800000 : f32
    %257 = vector.broadcast %cst_164 : f32 to vector<16xf32>
    %258 = arith.maximumf %257, %256 : vector<16xf32>
    %259 = vector.shape_cast %258 : vector<16xf32> to vector<16x1xf32>
    %260 = vector.broadcast %259 : vector<16x1xf32> to vector<16x16xf32>
    %261 = arith.subf %255, %260 : vector<16x16xf32>
    %262 = math.exp %261 : vector<16x16xf32>
    %cst_165 = arith.constant dense<0.000000e+00> : vector<16xf32>
    %263 = vector.multi_reduction <add>, %262, %cst_165 [1] : vector<16x16xf32> to vector<16xf32>
    %264 = vector.shape_cast %263 : vector<16xf32> to vector<16x1xf32>
    %265 = vector.broadcast %264 : vector<16x1xf32> to vector<16x16xf32>
    %266 = arith.divf %262, %265 : vector<16x16xf32>
    %cst_166 = arith.constant dense<0.000000e+00> : vector<16x8xf32>
    %267 = tpu.matmul %266, %246, %cst_166 {dimension_numbers = #tpu.dot_dimension_numbers<[1], [0], [0], [1], [0, 0, 1, 1], [], []>} : vector<16x16xf32>, vector<16x8xf32>, vector<16x8xf32> -> vector<16x8xf32>
    %cst_167 = arith.constant dense<0.000000e+00> : vector<16x4xf32>
    %268 = tpu.matmul %240, %249, %cst_167 {dimension_numbers = #tpu.dot_dimension_numbers<[1], [1], [0], [0], [0, 0, 1, 0], [], []>} : vector<16x8xf32>, vector<4x8xf32>, vector<16x4xf32> -> vector<16x4xf32>
    %cst_168 = arith.constant dense<0xFF800000> : vector<16xf32>
    %269 = vector.multi_reduction <maximumf>, %268, %cst_168 [1] : vector<16x4xf32> to vector<16xf32>
    %cst_169 = arith.constant 0xFF800000 : f32
    %270 = vector.broadcast %cst_169 : f32 to vector<16xf32>
    %271 = arith.maximumf %270, %269 : vector<16xf32>
    %272 = vector.shape_cast %271 : vector<16xf32> to vector<16x1xf32>
    %273 = vector.broadcast %272 : vector<16x1xf32> to vector<16x4xf32>
    %274 = arith.subf %268, %273 : vector<16x4xf32>
    %275 = math.exp %274 : vector<16x4xf32>
    %cst_170 = arith.constant dense<0.000000e+00> : vector<16xf32>
    %276 = vector.multi_reduction <add>, %275, %cst_170 [1] : vector<16x4xf32> to vector<16xf32>
    %277 = vector.shape_cast %276 : vector<16xf32> to vector<16x1xf32>
    %278 = vector.broadcast %277 : vector<16x1xf32> to vector<16x4xf32>
    %279 = arith.divf %275, %278 : vector<16x4xf32>
    %cst_171 = arith.constant dense<0.000000e+00> : vector<16x8xf32>
    %280 = tpu.matmul %279, %252, %cst_171 {dimension_numbers = #tpu.dot_dimension_numbers<[1], [0], [0], [1], [0, 0, 1, 1], [], []>} : vector<16x4xf32>, vector<4x8xf32>, vector<16x8xf32> -> vector<16x8xf32>
    %281 = arith.addf %267, %280 : vector<16x8xf32>
    %c3_172 = arith.constant 3 : index
    %c0_173 = arith.constant 0 : index
    %c0_174 = arith.constant 0 : index
    %282 = vector.load %arg7[%c3_172, %c0_173, %c0_174] : memref<4x8x32xf32, #tpu.memory_space<vmem>>, vector<1x8x32xf32>
    %283 = vector.shape_cast %282 : vector<1x8x32xf32> to vector<8x32xf32>
    %cst_175 = arith.constant dense<0.000000e+00> : vector<16x32xf32>
    %284 = tpu.matmul %281, %283, %cst_175 {dimension_numbers = #tpu.dot_dimension_numbers<[1], [0], [0], [1], [0, 0, 1, 1], [], []>} : vector<16x8xf32>, vector<8x32xf32>, vector<16x32xf32> -> vector<16x32xf32>
    %285 = arith.addf %221, %284 : vector<16x32xf32>
    %c0_176 = arith.constant 0 : index
    %c0_177 = arith.constant 0 : index
    %286 = vector.load %arg8[%c0_176, %c0_177] : memref<1x32xf32, #tpu.memory_space<vmem>>, vector<1x32xf32>
    %287 = vector.broadcast %286 : vector<1x32xf32> to vector<16x32xf32>
    %288 = arith.addf %285, %287 : vector<16x32xf32>
    %289 = arith.addf %288, %0 : vector<16x32xf32>
    %c0_178 = arith.constant 0 : index
    %c0_179 = arith.constant 0 : index
    %290 = vector.load %arg9[%c0_178, %c0_179] : memref<1x32xf32, #tpu.memory_space<vmem>>, vector<1x32xf32>
    %c0_180 = arith.constant 0 : index
    %c0_181 = arith.constant 0 : index
    %291 = vector.load %arg10[%c0_180, %c0_181] : memref<1x32xf32, #tpu.memory_space<vmem>>, vector<1x32xf32>
    %cst_182 = arith.constant dense<0.000000e+00> : vector<16xf32>
    %292 = vector.multi_reduction <add>, %289, %cst_182 [1] : vector<16x32xf32> to vector<16xf32>
    %293 = vector.shape_cast %292 : vector<16xf32> to vector<16x1xf32>
    %cst_183 = arith.constant 3.200000e+01 : f32
    %294 = vector.broadcast %cst_183 : f32 to vector<16x1xf32>
    %295 = arith.divf %293, %294 : vector<16x1xf32>
    %296 = vector.broadcast %295 : vector<16x1xf32> to vector<16x32xf32>
    %297 = arith.subf %289, %296 : vector<16x32xf32>
    %298 = arith.mulf %297, %297 : vector<16x32xf32>
    %cst_184 = arith.constant dense<0.000000e+00> : vector<16xf32>
    %299 = vector.multi_reduction <add>, %298, %cst_184 [1] : vector<16x32xf32> to vector<16xf32>
    %300 = vector.shape_cast %299 : vector<16xf32> to vector<16x1xf32>
    %cst_185 = arith.constant 3.200000e+01 : f32
    %301 = vector.broadcast %cst_185 : f32 to vector<16x1xf32>
    %302 = arith.divf %300, %301 : vector<16x1xf32>
    %303 = vector.broadcast %295 : vector<16x1xf32> to vector<16x32xf32>
    %304 = arith.subf %289, %303 : vector<16x32xf32>
    %cst_186 = arith.constant 9.99999974E-6 : f32
    %305 = vector.broadcast %cst_186 : f32 to vector<16x1xf32>
    %306 = arith.addf %302, %305 : vector<16x1xf32>
    %307 = math.rsqrt %306 : vector<16x1xf32>
    %308 = vector.broadcast %307 : vector<16x1xf32> to vector<16x32xf32>
    %309 = arith.mulf %304, %308 : vector<16x32xf32>
    %310 = vector.broadcast %290 : vector<1x32xf32> to vector<16x32xf32>
    %311 = arith.mulf %309, %310 : vector<16x32xf32>
    %312 = vector.broadcast %291 : vector<1x32xf32> to vector<16x32xf32>
    %313 = arith.addf %311, %312 : vector<16x32xf32>
    %c0_187 = arith.constant 0 : index
    %c0_188 = arith.constant 0 : index
    %314 = vector.load %arg11[%c0_187, %c0_188] : memref<32x128xf32, #tpu.memory_space<vmem>>, vector<32x128xf32>
    %cst_189 = arith.constant dense<0.000000e+00> : vector<16x128xf32>
    %315 = tpu.matmul %313, %314, %cst_189 {dimension_numbers = #tpu.dot_dimension_numbers<[1], [0], [0], [1], [0, 0, 1, 1], [], []>} : vector<16x32xf32>, vector<32x128xf32>, vector<16x128xf32> -> vector<16x128xf32>
    %c0_190 = arith.constant 0 : index
    %c0_191 = arith.constant 0 : index
    %316 = vector.load %arg12[%c0_190, %c0_191] : memref<1x128xf32, #tpu.memory_space<vmem>>, vector<1x128xf32>
    %317 = vector.broadcast %316 : vector<1x128xf32> to vector<16x128xf32>
    %318 = arith.addf %315, %317 : vector<16x128xf32>
    %cst_192 = arith.constant 5.000000e-01 : f32
    %319 = vector.broadcast %cst_192 : f32 to vector<16x128xf32>
    %320 = arith.mulf %319, %318 : vector<16x128xf32>
    %cst_193 = arith.constant 4.471500e-02 : f32
    %321 = vector.broadcast %cst_193 : f32 to vector<16x128xf32>
    %322 = arith.mulf %321, %318 : vector<16x128xf32>
    %323 = arith.mulf %322, %318 : vector<16x128xf32>
    %324 = arith.mulf %323, %318 : vector<16x128xf32>
    %325 = arith.addf %318, %324 : vector<16x128xf32>
    %cst_194 = arith.constant 0.797884583 : f32
    %326 = vector.broadcast %cst_194 : f32 to vector<16x128xf32>
    %327 = arith.mulf %326, %325 : vector<16x128xf32>
    %328 = math.tanh %327 : vector<16x128xf32>
    %cst_195 = arith.constant 1.000000e+00 : f32
    %329 = vector.broadcast %cst_195 : f32 to vector<16x128xf32>
    %330 = arith.addf %329, %328 : vector<16x128xf32>
    %331 = arith.mulf %320, %330 : vector<16x128xf32>
    %c0_196 = arith.constant 0 : index
    %c0_197 = arith.constant 0 : index
    %332 = vector.load %arg13[%c0_196, %c0_197] : memref<128x32xf32, #tpu.memory_space<vmem>>, vector<128x32xf32>
    %cst_198 = arith.constant dense<0.000000e+00> : vector<16x32xf32>
    %333 = tpu.matmul %331, %332, %cst_198 {dimension_numbers = #tpu.dot_dimension_numbers<[1], [0], [0], [1], [0, 0, 1, 1], [], []>} : vector<16x128xf32>, vector<128x32xf32>, vector<16x32xf32> -> vector<16x32xf32>
    %c0_199 = arith.constant 0 : index
    %c0_200 = arith.constant 0 : index
    %334 = vector.load %arg14[%c0_199, %c0_200] : memref<1x32xf32, #tpu.memory_space<vmem>>, vector<1x32xf32>
    %335 = vector.broadcast %334 : vector<1x32xf32> to vector<16x32xf32>
    %336 = arith.addf %333, %335 : vector<16x32xf32>
    %337 = arith.addf %289, %336 : vector<16x32xf32>
    %c0_201 = arith.constant 0 : index
    %c0_202 = arith.constant 0 : index
    %338 = vector.load %arg15[%c0_201, %c0_202] : memref<16x32xf32, #tpu.memory_space<vmem>>, vector<16x32xf32>
    tpu.vector_store %arg15[%c0_201, %c0_202], %337 {strides = array<i32>} : memref<16x32xf32, #tpu.memory_space<vmem>>, vector<16x32xf32>,
    return
  }
}

</mosaic_0001>

<bundles_post_ra>
// kernel: tpu_custom_call.1
= control target key start
LH: loop header
LB: loop body
LE: loop exit
PB: predicated region body
PF: predicated region fallthrough
CT: control target
= control target key end

     0   :  { %vm60_vm0 = vcmask 261120   ;;  %s5787_s0 = inlined_call_operand.vmem [shape: f32[16,32], index: 0, kind: input, shape index: {}]   ;;  %s5788_s1 = inlined_call_operand.vmem [shape: f32[4,32], index: 1, kind: input, shape index: {}]   ;;  %s5789_s2 = inlined_call_operand.vmem [shape: f32[16,16], index: 2, kind: input, shape index: {}]   ;;  %s5790_s3 = inlined_call_operand.vmem [shape: f32[1,32], index: 3, kind: input, shape index: {}]   ;;  %s5791_s4 = inlined_call_operand.vmem [shape: f32[1,32], index: 4, kind: input, shape index: {}]   ;;  %s5792_s5 = inlined_call_operand.vmem [shape: f32[16,32,8], index: 5, kind: input, shape index: {}]   ;;  %s5793_s6 = inlined_call_operand.vmem [shape: f32[16,1,8], index: 6, kind: input, shape index: {}]   ;;  %s5794_s7 = inlined_call_operand.vmem [shape: f32[4,8,32], index: 7, kind: input, shape index: {}]   ;;  %s5795_s8 = inlined_call_operand.vmem [shape: f32[1,32], index: 8, kind: input, shape index: {}]   ;;  %s5796_s9 = inlined_call_operand.vmem [shape: f32[1,32], index: 9, kind: input, shape index: {}]   ;;  %s5797_s10 = inlined_call_operand.vmem [shape: f32[1,32], index: 10, kind: input, shape index: {}]   ;;  %s5798_s11 = inlined_call_operand.vmem [shape: f32[32,128], index: 11, kind: input, shape index: {}]   ;;  %s5799_s12 = inlined_call_operand.vmem [shape: f32[1,128], index: 12, kind: input, shape index: {}]   ;;  %s5800_s13 = inlined_call_operand.vmem [shape: f32[128,32], index: 13, kind: input, shape index: {}]   ;;  %s5801_s14 = inlined_call_operand.vmem [shape: f32[1,32], index: 14, kind: input, shape index: {}]   ;;  %s5802_s15 = inlined_call_operand.hbm [shape: f32[16,32], index: 15, kind: output, shape index: {}]  }
   0x1   :  { %v51_v0 = vld [vmem:[%s5787_s0] sm:$0xff]  ;;  %v52_v1 = vld [vmem:[%s5787_s0 + $0x8] sm:$0xff] }
   0x2   :  { %20 = vsyncpa [#allocation3], 0  ;;  %v61_v2 = vsel %vm60_vm0, %v51_v0, 0.0  ;;  %v64_v3 = vsel %vm60_vm0, %v52_v1, 0.0  ;;  %v104_v14 = vld [vmem:[%s5792_s5] sm:$0xff]  ;;  %v105_v15 = vld [vmem:[%s5792_s5 + $0x8] sm:$0xff] }
   0x3   :  { %62 = vadd.xlane.f32.xlu0 %v61_v2  ;;  %v4682_v16 = vpack.c.bf16 %v105_v15, %v104_v14  ;;  %v106_v17 = vld [vmem:[%s5792_s5 + $0x10] sm:$0xff]  ;;  %v107_v18 = vld [vmem:[%s5792_s5 + $0x18] sm:$0xff]  ;;  %v3907_v20 = vld [vmem:[%s5792_s5 + $0x80] sm:$0xff]  ;;  %v5029_v24 = vmov 0.0|0.0   ;;  %vm5030_vm1 = vmmov 0   ;;  %v5031_v31 = vmov 0.0  }
   0x4   :  { %v4686_v19 = vpack.c.bf16 %v107_v18, %v106_v17  ;;  %v3908_v21 = vld [vmem:[%s5792_s5 + $0x88] sm:$0xff]  ;;  %v3917_v23 = vld [vmem:[%s5792_s5 + $0x180] sm:$0xff]  ;;  %4712 = vmatprep.subr.bf16.mxu0 %v5029_v24  ;;  %v3919_v27 = vld [vmem:[%s5792_s5 + $0x190] sm:$0xff]  ;;  %4352 = vmatprep.mubr.msk.f32.mxu0 %vm5030_vm1, %v5031_v31  ;;  %vm528_vm2 = vcmask 64512   ;;  %vm748_vm4 = vcmask 1043456   ;;  %vm719_vm5 = vcmask 31744  }
   0x5   :  { %4683 = vmatprep.subr.bf16.mxu1 %v4682_v16  ;;  %v4690_v22 = vpack.c.bf16 %v3908_v21, %v3907_v20  ;;  %v3918_v25 = vld [vmem:[%s5792_s5 + $0x188] sm:$0xff]  ;;  %v3920_v28 = vld [vmem:[%s5792_s5 + $0x198] sm:$0xff]  ;;  %v5160_v30 = vld [vmem:[%s5788_s1] sm:$0xf]  ;;  %vm618_vm8 = vcmask 130048   ;;  %s5032_s24 = smov [#allocation2]  }
   0x6   :  { %4685 = vmatpush3.bf16.msra.mxu1 %v4682_v16  ;;  %v4713_v26 = vpack.c.bf16 %v3918_v25, %v3917_v23  ;;  %v4716_v29 = vpack.c.bf16 %v3920_v28, %v3919_v27  ;;  %v3905_v39 = vld [vmem:[%s5790_s3] ss:$0 sm:$0xff]  ;;  %v3909_v46 = vld [vmem:[%s5792_s5 + $0x90] sm:$0xff]  ;;  %v3910_v47 = vld [vmem:[%s5792_s5 + $0x98] sm:$0xff] }
   0x7   :  { %65 = vadd.xlane.f32.xlu0 %v64_v3  ;;  %4687 = vmatprep.subr.bf16.mxu1 %v4686_v19  ;;  %v3906_v41 = vld [vmem:[%s5791_s4] ss:$0 sm:$0xff]  ;;  %v4694_v50 = vpack.c.bf16 %v3910_v47, %v3909_v46  ;;  %v3913_v52 = vld [vmem:[%s5792_s5 + $0x108] sm:$0xff]  ;;  %v3914_v54 = vld [vmem:[%s5792_s5 + $0x110] sm:$0xff] }
   0x8   :  { %4714 = vmatpush3.bf16.msra.mxu0 %v4713_v26  ;;  %v3912_v51 = vld [vmem:[%s5792_s5 + $0x100] sm:$0xff]  ;;  %v3915_v55 = vld [vmem:[%s5792_s5 + $0x118] sm:$0xff]  ;;  %v3932_v3 = vld [vmem:[%s5793_s6 + $0xc] ss:$0 sm:$0xff] }
   0x9   :  { %4715 = vmatprep.subr.bf16.mxu0 %v5029_v24  ;;  %v4698_v53 = vpack.c.bf16 %v3913_v52, %v3912_v51  ;;  %v4702_v56 = vpack.c.bf16 %v3915_v55, %v3914_v54  ;;  %v3922_v59 = vld [vmem:[%s5793_s6] ss:$0 sm:$0xff]  ;;  %v3925_v63 = vld [vmem:[%s5793_s6 + $0x4] ss:$0 sm:$0xff]  ;;  %vm5225_vm3 = vmpackc.low %vm528_vm2, %vm528_vm2 }
   0xa   :  { %4689 = vmatpush3.bf16.msra.mxu1 %v4686_v19  ;;  %v3946_v15 = vld [vmem:[%s5792_s5 + $0x20] sm:$0xff]  ;;  %v3947_v16 = vld [vmem:[%s5792_s5 + $0x28] sm:$0xff]  ;;  %v3948_v21 = vld [vmem:[%s5792_s5 + $0x30] sm:$0xff] }
   0xb   :  { %4691 = vmatprep.subr.bf16.mxu1 %v4690_v22  ;;  %v4728_v20 = vpack.c.bf16 %v3947_v16, %v3946_v15  ;;  %v3956_v25 = vld [vmem:[%s5792_s5 + $0x120] sm:$0xff]  ;;  %v3957_v26 = vld [vmem:[%s5792_s5 + $0x128] sm:$0xff]  ;;  %v3958_v28 = vld [vmem:[%s5792_s5 + $0x130] sm:$0xff] }
   0xc   :  { %4717 = vmatpush3.bf16.msra.mxu0 %v4716_v29  ;;  %v4744_v27 = vpack.c.bf16 %v3957_v26, %v3956_v25  ;;  %v3959_v29 = vld [vmem:[%s5792_s5 + $0x138] sm:$0xff] }
   0xf   :  { %4353 = vmatmul.mubr.msk.f32.vlgmr.msra.gmra.mrb[0].mxu0 %vm60_vm0, %v5160_v30 }
  0x90   :  { %v63_v4 = vpop.xlane.xlu0 %62 }
  0x91   :  { %v68_v5 = vmul.f32 0.03125, %v63_v4 }
  0x93   :  { %v70_v6 = vsub.f32 %v51_v0, %v68_v5 }
  0x94   :  { %v66_v7 = vpop.xlane.xlu0 %65 }
  0x95   :  { %v69_v8 = vmul.f32 0.03125, %v66_v7  ;;  %v72_v9 = vmul.f32 %v70_v6, %v70_v6 }
  0x97   :  { %v71_v10 = vsub.f32 %v52_v1, %v69_v8  ;;  %v74_v11 = vsel %vm60_vm0, %v72_v9, 0.0  ;;  %v3928_v8 = vld [vmem:[%s5793_s6 + $0x8] ss:$0 sm:$0xff] }
  0x98   :  { %75 = vadd.xlane.f32.xlu1 %v74_v11 }
  0x99   :  { %v73_v12 = vmul.f32 %v71_v10, %v71_v10 }
  0x9b   :  { %v77_v13 = vsel %vm60_vm0, %v73_v12, 0.0 }
  0x9c   :  { %78 = vadd.xlane.f32.xlu1 %v77_v13 }
  0xe2   :  { %v524_v57 = vpop.f32.mrb[0].mxu0 }
  0xe3   :  { %v4354_v58 = vpop.f32.mrb[1].mxu0  ;;  %v525_v7 = vadd.f32 %v3932_v3, %v524_v57 }
  0xe4   :  { %v3972_v58 = vld [vmem:[%s5793_s6 + $0x9] ss:$0 sm:$0xff] }
 0x125   :  { %v76_v32 = vpop.xlane.xlu1 %75 }
 0x126   :  { %v80_v33 = vmul.f32 0.03125, %v76_v32  ;;  %v4748_v32 = vpack.c.bf16 %v3959_v29, %v3958_v28  ;;  %v3951_v28 = vld [vmem:[%s5792_s5 + $0xa0] sm:$0xff]  ;;  %v3952_v29 = vld [vmem:[%s5792_s5 + $0xa8] sm:$0xff] }
 0x128   :  { %v82_v34 = vadd.f32 1e-05, %v80_v33  ;;  %v3961_v33 = vld [vmem:[%s5792_s5 + $0x1a0] sm:$0xff] }
 0x129   :  { %v79_v35 = vpop.xlane.xlu1 %78 }
 0x12a   :  { %4926 = vrsqrt.f32 %v82_v34  ;;  %v81_v36 = vmul.f32 0.03125, %v79_v35  ;;  %v3962_v34 = vld [vmem:[%s5792_s5 + $0x1a8] sm:$0xff] }
 0x12b   :  { %v4759_v35 = vpack.c.bf16 %v3962_v34, %v3961_v33 }
 0x12c   :  { %v83_v37 = vadd.f32 1e-05, %v81_v36  ;;  %v3963_v36 = vld [vmem:[%s5792_s5 + $0x1b0] sm:$0xff] }
 0x12e   :  { %4928 = vrsqrt.f32 %v83_v37  ;;  %v3964_v37 = vld [vmem:[%s5792_s5 + $0x1b8] sm:$0xff] }
 0x134   :  { %v4927_v38 = vpop.eup %4926 }
 0x135   :  { %v86_v40 = vmul.f32 %v4927_v38, %v70_v6  ;;  %v4762_v38 = vpack.c.bf16 %v3964_v37, %v3963_v36 }
 0x137   :  { %v94_v42 = vmul.f32 %v3905_v39, %v86_v40 }
 0x138   :  { %v4929_v43 = vpop.eup %4928 }
 0x139   :  { %v5172_v44 = vadd.f32 %v3906_v41, %v94_v42  ;;  %v87_v45 = vmul.f32 %v4929_v43, %v71_v10  ;;  %v5303_v42 = vld [vmem:[%s5789_s2] sm:$0xff] }
 0x13a   :  { %vm56_vm7 = vcmp.gt.f32.partialorder %v5303_v42, 0.5 }
 0x13b   :  { %v95_v48 = vmul.f32 %v3905_v39, %v87_v45  ;;  %4308 = vmatprep.mubr.msk.f32.mxu1 %vm60_vm0, %v5172_v44 }
 0x13d   :  { %v5182_v49 = vadd.f32 %v3906_v41, %v95_v48  ;;  %v5298_v41 = vld [vmem:[%s5789_s2 + $0x8] sm:$0xff] }
 0x13e   :  { %vm57_vm6 = vcmp.gt.f32.partialorder %v5298_v41, 0.5 }
 0x13f   :  { %4309 = vmatmul.mubr.msk.f32.vlgmr.msra.gmra.mrb[0].mxu1 %vm60_vm0, %v5182_v49 }
 0x140   :  { %4693 = vmatpush3.bf16.msra.mxu1 %v4690_v22  ;;  %4319 = vmatprep.mubr.msk.f32.mxu1 %vm60_vm0, %v5172_v44 }
 0x141   :  { %4695 = vmatprep.subr.bf16.mxu1 %v4694_v50 }
 0x144   :  { %4697 = vmatpush3.bf16.msra.mxu1 %v4694_v50 }
 0x145   :  { %4699 = vmatprep.subr.bf16.mxu1 %v4698_v53 }
 0x147   :  { %4320 = vmatmul.mubr.msk.f32.vlgmr.msra.gmra.mrb[2].mxu1 %vm60_vm0, %v5182_v49 }
 0x148   :  { %4701 = vmatpush3.bf16.msra.mxu1 %v4698_v53  ;;  %4330 = vmatprep.mubr.msk.f32.mxu1 %vm60_vm0, %v5172_v44  ;;  %v3966_v53 = vld [vmem:[%s5793_s6 + $0x1] ss:$0 sm:$0xff] }
 0x149   :  { %4703 = vmatprep.subr.bf16.mxu1 %v4702_v56 }
 0x14c   :  { %4705 = vmatpush3.bf16.msra.mxu1 %v4702_v56 }
 0x14d   :  { %4706 = vmatprep.subr.bf16.mxu1 %v5029_v24 }
 0x14f   :  { %4331 = vmatmul.mubr.msk.f32.vlgmr.msra.gmra.mrb[4].mxu1 %vm60_vm0, %v5182_v49 }
 0x150   :  { %4708 = vmatpush3.bf16.msra.mxu1 %v4690_v22  ;;  %4341 = vmatprep.mubr.msk.f32.mxu1 %vm5030_vm1, %v5031_v31  ;;  %v3949_v22 = vld [vmem:[%s5792_s5 + $0x38] sm:$0xff] }
 0x151   :  { %4709 = vmatprep.subr.bf16.mxu1 %v5029_v24  ;;  %v4732_v23 = vpack.c.bf16 %v3949_v22, %v3948_v21 }
 0x154   :  { %4711 = vmatpush3.bf16.msra.mxu1 %v4694_v50 }
 0x157   :  { %4342 = vmatmul.mubr.msk.f32.vlgmr.msra.gmra.mrb[6].mxu1 %vm60_vm0, %v5160_v30 }
 0x212   :  { %v4310_v60 = vpop.f32.mrb[0].mxu1 }
 0x213   :  { %v208_v61 = vpop.f32.mrb[1].mxu1  ;;  %v214_v13 = vadd.f32 %v4310_v60, %v3922_v59 }
 0x214   :  { %v209_v62 = vadd.f32 %v3922_v59, %v208_v61 }
 0x216   :  { %4359 = vmatprep.mubr.msk.f32.mxu1 %vm528_vm2, %v209_v62  ;;  %4364 = vmatprep.mubr.msk.f32.mxu0 %vm528_vm2, %v209_v62 }
 0x21a   :  { %v4321_v0 = vpop.f32.mrb[2].mxu1 }
 0x21b   :  { %v295_v1 = vadd.f32 %v4321_v0, %v3925_v63  ;;  %v289_v2 = vpop.f32.mrb[3].mxu1 }
 0x21c   :  { %v290_v4 = vadd.f32 %v3925_v63, %v289_v2 }
 0x21e   :  { %v4718_v6 = vpack.c.bf16 %v295_v1, %v290_v4 }
 0x220   :  { %4720 = vmatprep.subr.msk.bf16.mxu1 %vm5225_vm3, %v4718_v6 }
 0x221   :  { %4723 = vmatpush3.bf16.xpose.msk.msra.mxu1 %vm5225_vm3, %v4718_v6 }
 0x222   :  { %v4332_v9 = vpop.f32.mrb[4].mxu1  ;;  %4367 = vmatprep.subr.msk.mxu1 %vm748_vm4, %v525_v7 }
 0x223   :  { %v376_v10 = vadd.f32 %v4332_v9, %v3928_v8  ;;  %v370_v11 = vpop.f32.mrb[5].mxu1 }
 0x224   :  { %v371_v12 = vadd.f32 %v3928_v8, %v370_v11 }
 0x226   :  { %v5237_v14 = vpack.c.bf16 %v376_v10, %v371_v12 }
 0x228   :  { %4360 = vmatmul.mubr.msk.f32.vlgmr.msra.gmra.mrb[8].mxu1 %vm528_vm2, %v214_v13 }
 0x229   :  { %4368 = vmatpush3.msk.msra.mxu1 %vm748_vm4, %v525_v7 }
 0x22a   :  { %v448_v17 = vpop.f32.mrb[6].mxu1  ;;  %4725 = vmatprep.subr.bf16.mxu1 %v5237_v14 }
 0x22b   :  { %v449_v18 = vadd.f32 %v3925_v63, %v448_v17  ;;  %v4343_v19 = vpop.f32.mrb[7].mxu1 }
 0x22d   :  { %4362 = vmatprep.subr.msk.mxu0 %vm528_vm2, %v449_v18 }
 0x22e   :  { %4363 = vmatpush3.xpose.msk.msra.mxu0 %vm528_vm2, %v449_v18 }
 0x22f   :  { %4729 = vmatprep.subr.bf16.mxu0 %v4728_v20 }
 0x231   :  { %4365 = vmatmul.mubr.msk.f32.vlgmr.msra.gmra.mrb[2].mxu0 %vm528_vm2, %v214_v13 }
 0x232   :  { %4731 = vmatpush3.bf16.msra.mxu0 %v4728_v20  ;;  %4387 = vmatprep.mubr.msk.f32.mxu0 %vm60_vm0, %v5172_v44 }
 0x233   :  { %4733 = vmatprep.subr.bf16.mxu0 %v4732_v23 }
 0x236   :  { %4735 = vmatpush3.bf16.msra.mxu0 %v4732_v23 }
 0x237   :  { %4745 = vmatprep.subr.bf16.mxu0 %v4744_v27 }
 0x239   :  { %4388 = vmatmul.mubr.msk.f32.vlgmr.msra.gmra.mrb[4].mxu0 %vm60_vm0, %v5182_v49 }
 0x23a   :  { %4747 = vmatpush3.bf16.msra.mxu0 %v4744_v27  ;;  %4409 = vmatprep.mubr.msk.f32.mxu0 %vm60_vm0, %v5172_v44 }
 0x23b   :  { %4749 = vmatprep.subr.bf16.mxu0 %v4748_v32 }
 0x23e   :  { %4751 = vmatpush3.bf16.msra.mxu0 %v4748_v32 }
 0x23f   :  { %4758 = vmatprep.subr.bf16.mxu0 %v5029_v24 }
 0x241   :  { %4410 = vmatmul.mubr.msk.f32.vlgmr.msra.gmra.mrb[6].mxu0 %vm60_vm0, %v5182_v49 }
 0x242   :  { %4431 = vmatprep.mubr.msk.f32.mxu0 %vm5030_vm1, %v5031_v31  ;;  %4760 = vmatpush3.bf16.msra.mxu0 %v4759_v35  ;;  %v4736_v35 = vpack.c.bf16 %v3952_v29, %v3951_v28 }
 0x243   :  { %4761 = vmatprep.subr.bf16.mxu0 %v5029_v24 }
 0x246   :  { %4763 = vmatpush3.bf16.msra.mxu0 %v4762_v38 }
 0x249   :  { %4432 = vmatmul.mubr.msk.f32.vlgmr.msra.gmra.mrb[8].mxu0 %vm60_vm0, %v5160_v30 }
 0x2fb   :  { %v4361_v39 = vpop.f32.mrb[8].mxu1 }
 0x2fc   :  { %v607_v40 = vpop.f32.mrb[9].mxu1  ;;  %v617_v47 = vsel %vm57_vm6, %v4361_v39, -10000.0  ;;  %v3953_v39 = vld [vmem:[%s5792_s5 + $0xb0] sm:$0xff] }
 0x2fd   :  { %v616_v50 = vsel %vm56_vm7, %v607_v40, -10000.0  ;;  %v622_v51 = vsel %vm618_vm8, %v617_v47, -inf  ;;  %v3954_v40 = vld [vmem:[%s5792_s5 + $0xb8] sm:$0xff] }
 0x2fe   :  { %v619_v52 = vsel %vm618_vm8, %v616_v50, -inf }
 0x304   :  { %v4366_v43 = vpop.f32.mrb[2].mxu0 }
 0x305   :  { %v710_v45 = vpop.f32.mrb[3].mxu0  ;;  %v723_v46 = vsel %vm719_vm5, %v4366_v43, -inf }
 0x306   :  { %724 = vmax.xlane.f32.xlu1 %v723_v46  ;;  %v720_v48 = vsel %vm719_vm5, %v710_v45, -inf }
 0x307   :  { %721 = vmax.xlane.f32.xlu0 %v720_v48 }
 0x30a   :  { %623 = vmax.xlane.f32.xlu1 %v622_v51 }
 0x30b   :  { %620 = vmax.xlane.f32.xlu0 %v619_v52 }
 0x30c   :  { %v4389_v54 = vpop.f32.mrb[4].mxu0 }
 0x30d   :  { %v5318_v55 = vadd.f32 %v4389_v54, %v3966_v53  ;;  %v1009_v56 = vpop.f32.mrb[5].mxu0 }
 0x30e   :  { %v5320_v57 = vadd.f32 %v3966_v53, %v1009_v56 }
 0x310   :  { %4443 = vmatprep.mubr.msk.f32.mxu0 %vm528_vm2, %v5320_v57 }
 0x314   :  { %v4411_v59 = vpop.f32.mrb[6].mxu0 }
 0x315   :  { %v1177_v60 = vadd.f32 %v4411_v59, %v3972_v58  ;;  %v1171_v61 = vpop.f32.mrb[7].mxu0 }
 0x316   :  { %v1172_v62 = vadd.f32 %v3972_v58, %v1171_v61 }
 0x318   :  { %v5327_v63 = vpack.c.bf16 %v1177_v60, %v1172_v62 }
 0x393   :  { %v725_v0 = vpop.xlane.xlu1 %724 }
 0x394   :  { %v727_v1 = vsub.f32 %v4366_v43, %v725_v0  ;;  %v722_v2 = vpop.xlane.xlu0 %721 }
 0x395   :  { %v726_v3 = vsub.f32 %v710_v45, %v722_v2  ;;  %v4740_v45 = vpack.c.bf16 %v3954_v40, %v3953_v39  ;;  %v3995_v39 = vld [vmem:[%s5792_s5 + $0x40] sm:$0xff]  ;;  %v3996_v40 = vld [vmem:[%s5792_s5 + $0x48] sm:$0xff] }
 0x396   :  { %v730_v4 = vmul.f32 1.442695, %v727_v1 }
 0x397   :  { %v728_v6 = vmul.f32 1.442695, %v726_v3  ;;  %v624_v7 = vpop.xlane.xlu1 %623 }
 0x398   :  { %4930 = vpow2.f32 %v730_v4  ;;  %v626_v8 = vsub.f32 %v617_v47, %v624_v7  ;;  %v621_v9 = vpop.xlane.xlu0 %620 }
 0x399   :  { %4932 = vpow2.f32 %v728_v6  ;;  %v625_v10 = vsub.f32 %v616_v50, %v621_v9  ;;  %v3969_v50 = vld [vmem:[%s5793_s6 + $0x5] ss:$0 sm:$0xff] }
 0x39a   :  { %v629_v11 = vmul.f32 1.442695, %v626_v8 }
 0x39b   :  { %v627_v12 = vmul.f32 1.442695, %v625_v10 }
 0x39c   :  { %4934 = vpow2.f32 %v629_v11 }
 0x39d   :  { %4936 = vpow2.f32 %v627_v12 }
 0x3a2   :  { %v4931_v13 = vpop.eup %4930 }
 0x3a3   :  { %v4933_v15 = vpop.eup %4932  ;;  %v735_v16 = vsel %vm719_vm5, %v4931_v13, 0.0 }
 0x3a4   :  { %736 = vadd.xlane.f32.xlu1 %v735_v16  ;;  %v732_v17 = vsel %vm719_vm5, %v4933_v15, 0.0 }
 0x3a5   :  { %733 = vadd.xlane.f32.xlu0 %v732_v17 }
 0x3a6   :  { %v4935_v18 = vpop.eup %4934 }
 0x3a7   :  { %v4937_v19 = vpop.eup %4936  ;;  %v634_v20 = vsel %vm618_vm8, %v4935_v18, 0.0 }
 0x3a8   :  { %635 = vadd.xlane.f32.xlu1 %v634_v20  ;;  %v631_v21 = vsel %vm618_vm8, %v4937_v19, 0.0 }
 0x3a9   :  { %632 = vadd.xlane.f32.xlu0 %v631_v21 }
 0x431   :  { %v737_v22 = vpop.xlane.xlu1 %736 }
 0x432   :  { %4938 = vrcp.f32 %v737_v22  ;;  %v734_v23 = vpop.xlane.xlu0 %733 }
 0x433   :  { %4940 = vrcp.f32 %v734_v23 }
 0x435   :  { %v636_v26 = vpop.xlane.xlu1 %635 }
 0x436   :  { %v633_v25 = vpop.xlane.xlu0 %632 }
 0x437   :  { %4942 = vrcp.f32 %v633_v25 }
 0x438   :  { %4944 = vrcp.f32 %v636_v26 }
 0x43c   :  { %v4939_v27 = vpop.eup %4938 }
 0x43d   :  { %v4941_v32 = vpop.eup %4940  ;;  %v741_v34 = vmul.f32 %v4939_v27, %v4931_v13 }
 0x43e   :  { %v739_v33 = vmul.f32 %v4941_v32, %v4933_v15 }
 0x440   :  { %4369 = vmatprep.mubr.msk.f32.mxu1 %vm719_vm5, %v739_v33  ;;  %v3990_v33 = vld [vmem:[%s5794_s7 + $0x8] sm:$0xff] }
 0x441   :  { %v4943_v36 = vpop.eup %4942  ;;  %4370 = vmatmul.mubr.msk.f32.vlgmr.msra.gmra.mrb[10].mxu1 %vm719_vm5, %v741_v34 }
 0x442   :  { %4727 = vmatpush3.bf16.msra.mxu1 %v5237_v14  ;;  %v638_v37 = vmul.f32 %v4943_v36, %v4937_v19  ;;  %v4945_v38 = vpop.eup %4944  ;;  %v1322_v14 = vpop.f32.mrb[8].mxu0 }
 0x443   :  { %4737 = vmatprep.subr.bf16.mxu1 %v4736_v35  ;;  %v640_v43 = vmul.f32 %v4945_v38, %v4935_v18  ;;  %v4433_v46 = vpop.f32.mrb[9].mxu0 }
 0x444   :  { %4376 = vmatprep.mubr.msk.f32.mxu1 %vm618_vm8, %v638_v37  ;;  %v4774_v46 = vpack.c.bf16 %v3996_v40, %v3995_v39  ;;  %v4043_v39 = vld [vmem:[%s5792_s5 + $0x68] sm:$0xff] }
 0x449   :  { %4377 = vmatmul.mubr.msk.f32.vlgmr.msra.gmra.mrb[10].mxu1 %vm618_vm8, %v640_v43 }
 0x44a   :  { %4739 = vmatpush3.bf16.msra.mxu1 %v4736_v35  ;;  %4398 = vmatprep.mubr.msk.f32.mxu1 %vm60_vm0, %v5172_v44 }
 0x44b   :  { %4741 = vmatprep.subr.bf16.mxu1 %v4740_v45 }
 0x44e   :  { %4743 = vmatpush3.bf16.msra.mxu1 %v4740_v45 }
 0x44f   :  { %4752 = vmatprep.subr.bf16.mxu1 %v5029_v24 }
 0x451   :  { %4399 = vmatmul.mubr.msk.f32.vlgmr.msra.gmra.mrb[12].mxu1 %vm60_vm0, %v5182_v49 }
 0x452   :  { %4754 = vmatpush3.bf16.msra.mxu1 %v4736_v35  ;;  %4420 = vmatprep.mubr.msk.f32.mxu1 %vm5030_vm1, %v5031_v31 }
 0x453   :  { %4755 = vmatprep.subr.bf16.mxu1 %v5029_v24 }
 0x456   :  { %4757 = vmatpush3.bf16.msra.mxu1 %v4740_v45 }
 0x459   :  { %4421 = vmatmul.mubr.msk.f32.vlgmr.msra.gmra.mrb[14].mxu1 %vm60_vm0, %v5160_v30 }
 0x45a   :  { %4438 = vmatprep.mubr.msk.f32.mxu1 %vm528_vm2, %v5320_v57  ;;  %v3976_v57 = vld [vmem:[%s5793_s6 + $0xd] ss:$0 sm:$0xff] }
 0x45b   :  { %v1323_v61 = vadd.f32 %v3976_v57, %v1322_v14 }
 0x51c   :  { %v5362_v47 = vpop.f32.mrb[10].mxu1 }
 0x51d   :  { %v5364_v48 = vpop.f32.mrb[11].mxu1 }
 0x524   :  { %v4400_v51 = vpop.f32.mrb[12].mxu1 }
 0x525   :  { %v1096_v52 = vadd.f32 %v4400_v51, %v3969_v50  ;;  %v1090_v53 = vpop.f32.mrb[13].mxu1 }
 0x526   :  { %v1091_v54 = vadd.f32 %v3969_v50, %v1090_v53  ;;  %v3997_v53 = vld [vmem:[%s5792_s5 + $0x50] sm:$0xff] }
 0x528   :  { %v4764_v56 = vpack.c.bf16 %v1096_v52, %v1091_v54  ;;  %v3998_v54 = vld [vmem:[%s5792_s5 + $0x58] sm:$0xff] }
 0x529   :  { %v4778_v57 = vpack.c.bf16 %v3998_v54, %v3997_v53  ;;  %v4048_v53 = vld [vmem:[%s5792_s5 + $0xe8] sm:$0xff] }
 0x52a   :  { %4766 = vmatprep.subr.msk.bf16.mxu1 %vm5225_vm3, %v4764_v56 }
 0x52b   :  { %4769 = vmatpush3.bf16.xpose.msk.msra.mxu1 %vm5225_vm3, %v4764_v56 }
 0x52c   :  { %v1246_v58 = vpop.f32.mrb[14].mxu1  ;;  %4458 = vmatprep.subr.mxu1 %v3990_v33 }
 0x52d   :  { %v1247_v59 = vadd.f32 %v3969_v50, %v1246_v58  ;;  %v4422_v60 = vpop.f32.mrb[15].mxu1  ;;  %v4005_v58 = vld [vmem:[%s5792_s5 + $0x140] sm:$0xff] }
 0x52e   :  { %v4007_v60 = vld [vmem:[%s5792_s5 + $0x150] sm:$0xff] }
 0x52f   :  { %4441 = vmatprep.subr.msk.mxu0 %vm528_vm2, %v1247_v59 }
 0x530   :  { %4442 = vmatpush3.xpose.msk.msra.mxu0 %vm528_vm2, %v1247_v59 }
 0x531   :  { %4446 = vmatprep.subr.msk.mxu0 %vm748_vm4, %v1323_v61 }
 0x532   :  { %4439 = vmatmul.mubr.msk.f32.vlgmr.msra.gmra.mrb[16].mxu1 %vm528_vm2, %v5318_v55 }
 0x533   :  { %4444 = vmatmul.mubr.msk.f32.vlgmr.msra.gmra.mrb[10].mxu0 %vm528_vm2, %v5318_v55  ;;  %4459 = vmatpush3.msra.mxu1 %v3990_v33 }
 0x534   :  { %4447 = vmatpush3.msk.msra.mxu0 %vm748_vm4, %v1323_v61  ;;  %v4008_v61 = vld [vmem:[%s5792_s5 + $0x158] sm:$0xff] }
 0x535   :  { %4771 = vmatprep.subr.bf16.mxu0 %v5327_v63 }
 0x605   :  { %v4440_v62 = vpop.f32.mrb[16].mxu1 }
 0x606   :  { %v1404_v0 = vpop.f32.mrb[17].mxu1  ;;  %v4445_v1 = vpop.f32.mrb[10].mxu0  ;;  %v1414_v4 = vsel %vm57_vm6, %v4440_v62, -10000.0  ;;  %v4794_v62 = vpack.c.bf16 %v4008_v61, %v4007_v60 }
 0x607   :  { %v1506_v2 = vpop.f32.mrb[11].mxu0  ;;  %v1518_v3 = vsel %vm719_vm5, %v4445_v1, -inf  ;;  %v1413_v7 = vsel %vm56_vm7, %v1404_v0, -10000.0  ;;  %v1418_v55 = vsel %vm618_vm8, %v1414_v4, -inf  ;;  %v4010_v0 = vld [vmem:[%s5792_s5 + $0x1c0] sm:$0xff] }
 0x608   :  { %1519 = vmax.xlane.f32.xlu1 %v1518_v3  ;;  %v1515_v6 = vsel %vm719_vm5, %v1506_v2, -inf  ;;  %v1415_v8 = vsel %vm618_vm8, %v1413_v7, -inf  ;;  %v908_v3 = vld [vmem:[%s5794_s7] sm:$0xff] }
 0x609   :  { %1516 = vmax.xlane.f32.xlu0 %v1515_v6  ;;  %4463 = vmatprep.subr.mxu1 %v908_v3  ;;  %v4013_v6 = vld [vmem:[%s5792_s5 + $0x1d8] sm:$0xff] }
 0x60c   :  { %1419 = vmax.xlane.f32.xlu1 %v1418_v55  ;;  %v4000_v55 = vld [vmem:[%s5792_s5 + $0xc0] sm:$0xff] }
 0x60d   :  { %1416 = vmax.xlane.f32.xlu0 %v1415_v8  ;;  %v4001_v8 = vld [vmem:[%s5792_s5 + $0xc8] sm:$0xff] }
 0x695   :  { %v1520_v9 = vpop.xlane.xlu1 %1519 }
 0x696   :  { %v1522_v10 = vsub.f32 %v4445_v1, %v1520_v9  ;;  %v1517_v11 = vpop.xlane.xlu0 %1516  ;;  %v4011_v1 = vld [vmem:[%s5792_s5 + $0x1c8] sm:$0xff] }
 0x697   :  { %v1521_v12 = vsub.f32 %v1506_v2, %v1517_v11  ;;  %v4805_v2 = vpack.c.bf16 %v4011_v1, %v4010_v0  ;;  %v4782_v11 = vpack.c.bf16 %v4001_v8, %v4000_v55  ;;  %v4065_v8 = vld [vmem:[%s5793_s6 + $0x7] ss:$0 sm:$0xff] }
 0x698   :  { %v1525_v13 = vmul.f32 1.442695, %v1522_v10 }
 0x699   :  { %v1523_v15 = vmul.f32 1.442695, %v1521_v12  ;;  %v1420_v16 = vpop.xlane.xlu1 %1419  ;;  %v4015_v12 = vld [vmem:[%s5793_s6 + $0x2] ss:$0 sm:$0xff] }
 0x69a   :  { %4946 = vpow2.f32 %v1525_v13  ;;  %v1422_v17 = vsub.f32 %v1414_v4, %v1420_v16  ;;  %v1417_v18 = vpop.xlane.xlu0 %1416  ;;  %v4012_v4 = vld [vmem:[%s5792_s5 + $0x1d0] sm:$0xff] }
 0x69b   :  { %4948 = vpow2.f32 %v1523_v15  ;;  %v1421_v19 = vsub.f32 %v1413_v7, %v1417_v18  ;;  %v4808_v7 = vpack.c.bf16 %v4013_v6, %v4012_v4  ;;  %v4002_v13 = vld [vmem:[%s5792_s5 + $0xd0] sm:$0xff]  ;;  %v4003_v15 = vld [vmem:[%s5792_s5 + $0xd8] sm:$0xff]  ;;  %v4062_v4 = vld [vmem:[%s5793_s6 + $0x3] ss:$0 sm:$0xff] }
 0x69c   :  { %v1425_v20 = vmul.f32 1.442695, %v1422_v17 }
 0x69d   :  { %v1423_v21 = vmul.f32 1.442695, %v1421_v19  ;;  %v4786_v19 = vpack.c.bf16 %v4003_v15, %v4002_v13 }
 0x69e   :  { %4950 = vpow2.f32 %v1425_v20 }
 0x69f   :  { %4952 = vpow2.f32 %v1423_v21 }
 0x6a4   :  { %v4947_v22 = vpop.eup %4946 }
 0x6a5   :  { %v4949_v23 = vpop.eup %4948  ;;  %v1530_v25 = vsel %vm719_vm5, %v4947_v22, 0.0 }
 0x6a6   :  { %1531 = vadd.xlane.f32.xlu1 %v1530_v25  ;;  %v1527_v26 = vsel %vm719_vm5, %v4949_v23, 0.0 }
 0x6a7   :  { %1528 = vadd.xlane.f32.xlu0 %v1527_v26 }
 0x6a8   :  { %v4951_v27 = vpop.eup %4950 }
 0x6a9   :  { %v4953_v28 = vpop.eup %4952  ;;  %v1430_v29 = vsel %vm618_vm8, %v4951_v27, 0.0 }
 0x6aa   :  { %1431 = vadd.xlane.f32.xlu1 %v1430_v29  ;;  %v1427_v32 = vsel %vm618_vm8, %v4953_v28, 0.0 }
 0x6ab   :  { %1428 = vadd.xlane.f32.xlu0 %v1427_v32 }
 0x733   :  { %v1532_v34 = vpop.xlane.xlu1 %1531 }
 0x734   :  { %4954 = vrcp.f32 %v1532_v34  ;;  %v1529_v35 = vpop.xlane.xlu0 %1528  ;;  %v4025_v34 = vld [vmem:[%s5793_s6 + $0xe] ss:$0 sm:$0xff] }
 0x735   :  { %4956 = vrcp.f32 %v1529_v35 }
 0x737   :  { %v1432_v37 = vpop.xlane.xlu1 %1431 }
 0x738   :  { %v1429_v36 = vpop.xlane.xlu0 %1428 }
 0x739   :  { %4958 = vrcp.f32 %v1429_v36 }
 0x73a   :  { %4960 = vrcp.f32 %v1432_v37 }
 0x73e   :  { %v4955_v38 = vpop.eup %4954 }
 0x73f   :  { %v4957_v43 = vpop.eup %4956  ;;  %v1536_v14 = vmul.f32 %v4955_v38, %v4947_v22  ;;  %v4042_v38 = vld [vmem:[%s5792_s5 + $0x60] sm:$0xff] }
 0x740   :  { %v1534_v45 = vmul.f32 %v4957_v43, %v4949_v23 }
 0x742   :  { %4448 = vmatprep.mubr.msk.f32.mxu0 %vm719_vm5, %v1534_v45 }
 0x743   :  { %v4959_v50 = vpop.eup %4958  ;;  %4449 = vmatmul.mubr.msk.f32.vlgmr.msra.gmra.mrb[12].mxu0 %vm719_vm5, %v1536_v14  ;;  %v4820_v14 = vpack.c.bf16 %v4043_v39, %v4042_v38 }
 0x744   :  { %4773 = vmatpush3.bf16.msra.mxu0 %v5327_v63  ;;  %v1434_v51 = vmul.f32 %v4959_v50, %v4953_v28  ;;  %v4961_v52 = vpop.eup %4960  ;;  %v4006_v63 = vld [vmem:[%s5792_s5 + $0x148] sm:$0xff]  ;;  %v4018_v28 = vld [vmem:[%s5793_s6 + $0x6] ss:$0 sm:$0xff]  ;;  %v4045_v50 = vld [vmem:[%s5792_s5 + $0x78] sm:$0xff] }
 0x745   :  { %4775 = vmatprep.subr.bf16.mxu0 %v4774_v46  ;;  %v1436_v56 = vmul.f32 %v4961_v52, %v4951_v27  ;;  %v4790_v59 = vpack.c.bf16 %v4006_v63, %v4005_v58  ;;  %v4047_v52 = vld [vmem:[%s5792_s5 + $0xe0] sm:$0xff] }
 0x746   :  { %4455 = vmatprep.mubr.msk.f32.mxu0 %vm618_vm8, %v1434_v51  ;;  %v4828_v54 = vpack.c.bf16 %v4048_v53, %v4047_v52 }
 0x74b   :  { %4456 = vmatmul.mubr.msk.f32.vlgmr.msra.gmra.mrb[12].mxu0 %vm618_vm8, %v1436_v56  ;;  %v4049_v56 = vld [vmem:[%s5792_s5 + $0xf0] sm:$0xff] }
 0x74c   :  { %4777 = vmatpush3.bf16.msra.mxu0 %v4774_v46  ;;  %4476 = vmatprep.mubr.msk.f32.mxu0 %vm60_vm0, %v5172_v44  ;;  %v4044_v46 = vld [vmem:[%s5792_s5 + $0x70] sm:$0xff] }
 0x74d   :  { %4779 = vmatprep.subr.bf16.mxu0 %v4778_v57  ;;  %v4824_v51 = vpack.c.bf16 %v4045_v50, %v4044_v46 }
 0x750   :  { %4781 = vmatpush3.bf16.msra.mxu0 %v4778_v57  ;;  %v4050_v57 = vld [vmem:[%s5792_s5 + $0xf8] sm:$0xff] }
 0x751   :  { %4791 = vmatprep.subr.bf16.mxu0 %v4790_v59  ;;  %v4832_v58 = vpack.c.bf16 %v4050_v57, %v4049_v56  ;;  %v4039_v56 = vld [vmem:[%s5794_s7 + $0x10] sm:$0xff] }
 0x753   :  { %4477 = vmatmul.mubr.msk.f32.vlgmr.msra.gmra.mrb[14].mxu0 %vm60_vm0, %v5182_v49 }
 0x754   :  { %4793 = vmatpush3.bf16.msra.mxu0 %v4790_v59  ;;  %4498 = vmatprep.mubr.msk.f32.mxu0 %vm60_vm0, %v5172_v44 }
 0x755   :  { %4795 = vmatprep.subr.bf16.mxu0 %v4794_v62 }
 0x758   :  { %4797 = vmatpush3.bf16.msra.mxu0 %v4794_v62 }
 0x759   :  { %4804 = vmatprep.subr.bf16.mxu0 %v5029_v24 }
 0x75b   :  { %4499 = vmatmul.mubr.msk.f32.vlgmr.msra.gmra.mrb[16].mxu0 %vm60_vm0, %v5182_v49 }
 0x75c   :  { %4520 = vmatprep.mubr.msk.f32.mxu0 %vm5030_vm1, %v5031_v31  ;;  %4806 = vmatpush3.bf16.msra.mxu0 %v4805_v2 }
 0x75d   :  { %4807 = vmatprep.subr.bf16.mxu0 %v5029_v24 }
 0x760   :  { %4809 = vmatpush3.bf16.msra.mxu0 %v4808_v7 }
 0x763   :  { %4521 = vmatmul.mubr.msk.f32.vlgmr.msra.gmra.mrb[18].mxu0 %vm60_vm0, %v5160_v30 }
 0x81e   :  { %v4457_v9 = vpop.f32.mrb[12].mxu0 }
 0x81f   :  { %v1693_v10 = vpop.f32.mrb[13].mxu0 }
 0x820   :  { %4460 = vmatprep.mubr.msk.f32.mxu1 %vm528_vm2, %v1693_v10 }
 0x821   :  { %4461 = vmatmul.mubr.msk.f32.vlgmr.msra.gmra.mrb[18].mxu1 %vm528_vm2, %v4457_v9 }
 0x822   :  { %4464 = vmatpush3.msra.mxu1 %v908_v3  ;;  %4465 = vmatprep.mubr.msk.f32.mxu1 %vm528_vm2, %v5364_v48  ;;  %v4021_v48 = vld [vmem:[%s5793_s6 + $0xa] ss:$0 sm:$0xff] }
 0x823   :  { %4783 = vmatprep.subr.bf16.mxu1 %v4782_v11 }
 0x826   :  { %v4478_v16 = vpop.f32.mrb[14].mxu0 }
 0x827   :  { %v1972_v17 = vadd.f32 %v4478_v16, %v4015_v12  ;;  %v1966_v18 = vpop.f32.mrb[15].mxu0 }
 0x828   :  { %v1967_v20 = vadd.f32 %v4015_v12, %v1966_v18 }
 0x829   :  { %4466 = vmatmul.mubr.msk.f32.vlgmr.msra.gmra.mrb[18].mxu1 %vm528_vm2, %v5362_v47 }
 0x82a   :  { %4785 = vmatpush3.bf16.msra.mxu1 %v4782_v11  ;;  %4532 = vmatprep.mubr.msk.f32.mxu0 %vm528_vm2, %v1967_v20 }
 0x82b   :  { %4487 = vmatprep.mubr.msk.f32.mxu1 %vm60_vm0, %v5172_v44  ;;  %4787 = vmatprep.subr.bf16.mxu1 %v4786_v19 }
 0x82e   :  { %4789 = vmatpush3.bf16.msra.mxu1 %v4786_v19  ;;  %v4500_v21 = vpop.f32.mrb[16].mxu0 }
 0x82f   :  { %v2134_v22 = vadd.f32 %v4500_v21, %v4021_v48  ;;  %v2128_v23 = vpop.f32.mrb[17].mxu0  ;;  %4798 = vmatprep.subr.bf16.mxu1 %v5029_v24 }
 0x830   :  { %v2129_v25 = vadd.f32 %v4021_v48, %v2128_v23 }
 0x831   :  { %4488 = vmatmul.mubr.msk.f32.vlgmr.msra.gmra.mrb[20].mxu1 %vm60_vm0, %v5182_v49 }
 0x832   :  { %v5488_v47 = vpack.c.bf16 %v2134_v22, %v2129_v25  ;;  %4800 = vmatpush3.bf16.msra.mxu1 %v4782_v11  ;;  %4509 = vmatprep.mubr.msk.f32.mxu1 %vm5030_vm1, %v5031_v31 }
 0x833   :  { %4801 = vmatprep.subr.bf16.mxu1 %v5029_v24 }
 0x836   :  { %4803 = vmatpush3.bf16.msra.mxu1 %v4786_v19  ;;  %v2279_v26 = vpop.f32.mrb[18].mxu0 }
 0x837   :  { %v4522_v27 = vpop.f32.mrb[19].mxu0  ;;  %v2280_v37 = vadd.f32 %v4025_v34, %v2279_v26 }
 0x839   :  { %4510 = vmatmul.mubr.msk.f32.vlgmr.msra.gmra.mrb[22].mxu1 %vm60_vm0, %v5160_v30 }
 0x83a   :  { %4527 = vmatprep.mubr.msk.f32.mxu1 %vm528_vm2, %v1967_v20 }
 0x904   :  { %v4489_v29 = vpop.f32.mrb[20].mxu1 }
 0x905   :  { %v2053_v32 = vadd.f32 %v4489_v29, %v4018_v28  ;;  %v2047_v33 = vpop.f32.mrb[21].mxu1 }
 0x906   :  { %v2048_v35 = vadd.f32 %v4018_v28, %v2047_v33 }
 0x908   :  { %v4810_v36 = vpack.c.bf16 %v2053_v32, %v2048_v35 }
 0x90a   :  { %4812 = vmatprep.subr.msk.bf16.mxu1 %vm5225_vm3, %v4810_v36 }
 0x90b   :  { %4815 = vmatpush3.bf16.xpose.msk.msra.mxu1 %vm5225_vm3, %v4810_v36 }
 0x90c   :  { %v2203_v40 = vpop.f32.mrb[22].mxu1  ;;  %4535 = vmatprep.subr.msk.mxu1 %vm748_vm4, %v2280_v37 }
 0x90d   :  { %v2204_v43 = vadd.f32 %v4018_v28, %v2203_v40  ;;  %v4511_v45 = vpop.f32.mrb[23].mxu1 }
 0x90f   :  { %4530 = vmatprep.subr.msk.mxu0 %vm528_vm2, %v2204_v43 }
 0x910   :  { %4531 = vmatpush3.xpose.msk.msra.mxu0 %vm528_vm2, %v2204_v43 }
 0x911   :  { %4821 = vmatprep.subr.bf16.mxu0 %v4820_v14 }
 0x912   :  { %4528 = vmatmul.mubr.msk.f32.vlgmr.msra.gmra.mrb[24].mxu1 %vm528_vm2, %v1972_v17 }
 0x913   :  { %4533 = vmatmul.mubr.msk.f32.vlgmr.msra.gmra.mrb[20].mxu0 %vm528_vm2, %v1972_v17  ;;  %4536 = vmatpush3.msk.msra.mxu1 %vm748_vm4, %v2280_v37 }
 0x914   :  { %4817 = vmatprep.subr.bf16.mxu1 %v5488_v47  ;;  %4823 = vmatpush3.bf16.msra.mxu0 %v4820_v14 }
 0x915   :  { %4560 = vmatprep.mubr.msk.f32.mxu0 %vm60_vm0, %v5172_v44  ;;  %4825 = vmatprep.subr.bf16.mxu0 %v4824_v51 }
 0x918   :  { %4827 = vmatpush3.bf16.msra.mxu0 %v4824_v51 }
 0x919   :  { %4829 = vmatprep.subr.bf16.mxu0 %v4828_v54 }
 0x91b   :  { %4561 = vmatmul.mubr.msk.f32.vlgmr.msra.gmra.mrb[22].mxu0 %vm60_vm0, %v5182_v49 }
 0x91c   :  { %4831 = vmatpush3.bf16.msra.mxu0 %v4828_v54  ;;  %4571 = vmatprep.mubr.msk.f32.mxu0 %vm60_vm0, %v5172_v44 }
 0x91d   :  { %4833 = vmatprep.subr.bf16.mxu0 %v4832_v58 }
 0x920   :  { %4835 = vmatpush3.bf16.msra.mxu0 %v4832_v58 }
 0x921   :  { %4844 = vmatprep.subr.bf16.mxu0 %v5029_v24 }
 0x923   :  { %4572 = vmatmul.mubr.msk.f32.vlgmr.msra.gmra.mrb[24].mxu0 %vm60_vm0, %v5182_v49 }
 0x924   :  { %4846 = vmatpush3.bf16.msra.mxu0 %v4828_v54  ;;  %4593 = vmatprep.mubr.msk.f32.mxu0 %vm5030_vm1, %v5031_v31 }
 0x925   :  { %4847 = vmatprep.subr.bf16.mxu0 %v5029_v24 }
 0x928   :  { %4849 = vmatpush3.bf16.msra.mxu0 %v4832_v58 }
 0x92b   :  { %4594 = vmatmul.mubr.msk.f32.vlgmr.msra.gmra.mrb[26].mxu0 %vm60_vm0, %v5160_v30 }
 0x9e5   :  { %v4529_v63 = vpop.f32.mrb[24].mxu1 }
 0x9e6   :  { %v2361_v59 = vpop.f32.mrb[25].mxu1  ;;  %v4534_v60 = vpop.f32.mrb[20].mxu0  ;;  %v2371_v0 = vsel %vm57_vm6, %v4529_v63, -10000.0 }
 0x9e7   :  { %v2463_v61 = vpop.f32.mrb[21].mxu0  ;;  %v2475_v62 = vsel %vm719_vm5, %v4534_v60, -inf  ;;  %v2370_v2 = vsel %vm56_vm7, %v2361_v59, -10000.0  ;;  %v2375_v3 = vsel %vm618_vm8, %v2371_v0, -inf }
 0x9e8   :  { %2476 = vmax.xlane.f32.xlu1 %v2475_v62  ;;  %v2472_v1 = vsel %vm719_vm5, %v2463_v61, -inf  ;;  %v2372_v30 = vsel %vm618_vm8, %v2370_v2, -inf }
 0x9e9   :  { %2473 = vmax.xlane.f32.xlu0 %v2472_v1 }
 0x9ec   :  { %2376 = vmax.xlane.f32.xlu1 %v2375_v3 }
 0x9ed   :  { %2373 = vmax.xlane.f32.xlu0 %v2372_v30  ;;  %v4057_v30 = vld [vmem:[%s5792_s5 + $0x1e0] sm:$0xff] }
 0x9ee   :  { %v4562_v6 = vpop.f32.mrb[22].mxu0 }
 0x9ef   :  { %v2844_v7 = vpop.f32.mrb[23].mxu0  ;;  %v5573_v15 = vadd.f32 %v4562_v6, %v4062_v4 }
 0x9f0   :  { %v5562_v55 = vadd.f32 %v4062_v4, %v2844_v7  ;;  %v4058_v4 = vld [vmem:[%s5792_s5 + $0x1e8] sm:$0xff]  ;;  %v4059_v7 = vld [vmem:[%s5792_s5 + $0x1f0] sm:$0xff] }
 0x9f1   :  { %v4851_v6 = vpack.c.bf16 %v4058_v4, %v4057_v30  ;;  %v5003_v4 = vld [vmem:[%s5787_s0 + $0x8] sm:$0xff] }
 0x9f2   :  { %4611 = vmatprep.mubr.msk.f32.mxu0 %vm528_vm2, %v5562_v55 }
 0x9f6   :  { %v4573_v9 = vpop.f32.mrb[24].mxu0 }
 0x9f7   :  { %v2931_v10 = vadd.f32 %v4573_v9, %v4065_v8  ;;  %v2925_v11 = vpop.f32.mrb[25].mxu0  ;;  %v5002_v9 = vld [vmem:[%s5788_s1] sm:$0xf] }
 0x9f8   :  { %v2926_v12 = vadd.f32 %v4065_v8, %v2925_v11 }
 0x9fa   :  { %v4856_v13 = vpack.c.bf16 %v2931_v10, %v2926_v12 }
 0x9fc   :  { %4858 = vmatprep.subr.msk.bf16.mxu0 %vm5225_vm3, %v4856_v13 }
 0x9fd   :  { %4861 = vmatpush3.bf16.xpose.msk.msra.mxu0 %vm5225_vm3, %v4856_v13 }
 0x9fe   :  { %v3081_v16 = vpop.f32.mrb[26].mxu0 }
 0x9ff   :  { %v5577_v17 = vadd.f32 %v4065_v8, %v3081_v16  ;;  %v4595_v18 = vpop.f32.mrb[27].mxu0 }
 0xa04   :  { %4612 = vmatmul.mubr.msk.f32.vlgmr.msra.gmra.mrb[28].mxu0 %vm528_vm2, %v5573_v15 }
 0xa75   :  { %v2477_v19 = vpop.xlane.xlu1 %2476 }
 0xa76   :  { %v2479_v20 = vsub.f32 %v4534_v60, %v2477_v19  ;;  %v2474_v48 = vpop.xlane.xlu0 %2473  ;;  %v4052_v60 = vld [vmem:[%s5792_s5 + $0x160] sm:$0xff] }
 0xa77   :  { %v2478_v21 = vsub.f32 %v2463_v61, %v2474_v48  ;;  %v4053_v61 = vld [vmem:[%s5792_s5 + $0x168] sm:$0xff] }
 0xa78   :  { %v2482_v22 = vmul.f32 1.442695, %v2479_v20  ;;  %v4836_v62 = vpack.c.bf16 %v4053_v61, %v4052_v60 }
 0xa79   :  { %v2480_v23 = vmul.f32 1.442695, %v2478_v21  ;;  %v2377_v25 = vpop.xlane.xlu1 %2376 }
 0xa7a   :  { %4962 = vpow2.f32 %v2482_v22  ;;  %v2379_v26 = vsub.f32 %v2371_v0, %v2377_v25  ;;  %v2374_v5 = vpop.xlane.xlu0 %2373  ;;  %v4055_v0 = vld [vmem:[%s5792_s5 + $0x178] sm:$0xff] }
 0xa7b   :  { %4964 = vpow2.f32 %v2480_v23  ;;  %v2378_v27 = vsub.f32 %v2370_v2, %v2374_v5 }
 0xa7c   :  { %v2382_v28 = vmul.f32 1.442695, %v2379_v26 }
 0xa7d   :  { %v2380_v29 = vmul.f32 1.442695, %v2378_v27 }
 0xa7e   :  { %4966 = vpow2.f32 %v2382_v28 }
 0xa7f   :  { %4968 = vpow2.f32 %v2380_v29 }
 0xa84   :  { %v4963_v32 = vpop.eup %4962 }
 0xa85   :  { %v4965_v33 = vpop.eup %4964  ;;  %v2487_v34 = vsel %vm719_vm5, %v4963_v32, 0.0 }
 0xa86   :  { %2488 = vadd.xlane.f32.xlu1 %v2487_v34  ;;  %v2484_v35 = vsel %vm719_vm5, %v4965_v33, 0.0 }
 0xa87   :  { %2485 = vadd.xlane.f32.xlu0 %v2484_v35 }
 0xa88   :  { %v4967_v36 = vpop.eup %4966 }
 0xa89   :  { %v4969_v37 = vpop.eup %4968  ;;  %v2387_v38 = vsel %vm618_vm8, %v4967_v36, 0.0 }
 0xa8a   :  { %2388 = vadd.xlane.f32.xlu1 %v2387_v38  ;;  %v2384_v39 = vsel %vm618_vm8, %v4969_v37, 0.0 }
 0xa8b   :  { %2385 = vadd.xlane.f32.xlu0 %v2384_v39 }
 0xad7   :  { %v5583_v40 = vpop.f32.mrb[28].mxu0 }
 0xad8   :  { %v5585_v43 = vpop.f32.mrb[29].mxu0  ;;  %v3249_v20 = vsel %vm57_vm6, %v5583_v40, -10000.0 }
 0xad9   :  { %v3248_v21 = vsel %vm56_vm7, %v5585_v43, -10000.0  ;;  %v3253_v22 = vsel %vm618_vm8, %v3249_v20, -inf }
 0xada   :  { %v3250_v23 = vsel %vm618_vm8, %v3248_v21, -inf }
 0xb13   :  { %v2489_v45 = vpop.xlane.xlu1 %2488 }
 0xb14   :  { %4970 = vrcp.f32 %v2489_v45  ;;  %v2486_v14 = vpop.xlane.xlu0 %2485 }
 0xb15   :  { %4972 = vrcp.f32 %v2486_v14 }
 0xb17   :  { %v2389_v50 = vpop.xlane.xlu1 %2388 }
 0xb18   :  { %v2386_v46 = vpop.xlane.xlu0 %2385 }
 0xb19   :  { %4974 = vrcp.f32 %v2386_v46 }
 0xb1a   :  { %4976 = vrcp.f32 %v2389_v50 }
 0xb1e   :  { %v4971_v51 = vpop.eup %4970 }
 0xb1f   :  { %v4973_v52 = vpop.eup %4972  ;;  %v2493_v54 = vmul.f32 %v4971_v51, %v4963_v32 }
 0xb20   :  { %v2491_v53 = vmul.f32 %v4973_v52, %v4965_v33 }
 0xb22   :  { %4537 = vmatprep.mubr.msk.f32.mxu1 %vm719_vm5, %v2491_v53 }
 0xb23   :  { %v4975_v57 = vpop.eup %4974  ;;  %4538 = vmatmul.mubr.msk.f32.vlgmr.msra.gmra.mrb[26].mxu1 %vm719_vm5, %v2493_v54 }
 0xb24   :  { %4819 = vmatpush3.bf16.msra.mxu1 %v5488_v47  ;;  %v2391_v58 = vmul.f32 %v4975_v57, %v4969_v37  ;;  %v4977_v63 = vpop.eup %4976  ;;  %v4054_v47 = vld [vmem:[%s5792_s5 + $0x170] sm:$0xff] }
 0xb25   :  { %4547 = vmatprep.subr.mxu1 %v4039_v56  ;;  %v2393_v59 = vmul.f32 %v4977_v63, %v4967_v36  ;;  %v4840_v3 = vpack.c.bf16 %v4055_v0, %v4054_v47  ;;  %v4089_v0 = vld [vmem:[%s5795_s8] ss:$0 sm:$0xff] }
 0xb26   :  { %4544 = vmatprep.mubr.msk.f32.mxu1 %vm618_vm8, %v2391_v58  ;;  %v4086_v58 = vld [vmem:[%s5794_s7 + $0x18] sm:$0xff] }
 0xb2b   :  { %4545 = vmatmul.mubr.msk.f32.vlgmr.msra.gmra.mrb[26].mxu1 %vm618_vm8, %v2393_v59 }
 0xb2c   :  { %4548 = vmatpush3.msra.mxu1 %v4039_v56 }
 0xb2d   :  { %4837 = vmatprep.subr.bf16.mxu1 %v4836_v62 }
 0xbfe   :  { %v4546_v1 = vpop.f32.mrb[26].mxu1 }
 0xbff   :  { %v2650_v2 = vpop.f32.mrb[27].mxu1 }
 0xc00   :  { %4549 = vmatprep.mubr.msk.f32.mxu1 %vm528_vm2, %v2650_v2 }
 0xc01   :  { %4550 = vmatmul.mubr.msk.f32.vlgmr.msra.gmra.mrb[18].mxu1 %vm528_vm2, %v4546_v1 }
 0xc02   :  { %4839 = vmatpush3.bf16.msra.mxu1 %v4836_v62  ;;  %4582 = vmatprep.mubr.msk.f32.mxu1 %vm60_vm0, %v5172_v44  ;;  %v4060_v44 = vld [vmem:[%s5792_s5 + $0x1f8] sm:$0xff] }
 0xc03   :  { %4841 = vmatprep.subr.bf16.mxu1 %v4840_v3  ;;  %v4854_v8 = vpack.c.bf16 %v4060_v44, %v4059_v7  ;;  %v5004_v7 = vld [vmem:[%s5787_s0] sm:$0xff] }
 0xc06   :  { %4843 = vmatpush3.bf16.msra.mxu1 %v4840_v3 }
 0xc07   :  { %4850 = vmatprep.subr.bf16.mxu1 %v5029_v24 }
 0xc09   :  { %4583 = vmatmul.mubr.msk.f32.vlgmr.msra.gmra.mrb[28].mxu1 %vm60_vm0, %v5182_v49 }
 0xc0a   :  { %4852 = vmatpush3.bf16.msra.mxu1 %v4851_v6  ;;  %4604 = vmatprep.mubr.msk.f32.mxu1 %vm5030_vm1, %v5031_v31 }
 0xc0b   :  { %4853 = vmatprep.subr.bf16.mxu1 %v5029_v24  ;;  %v4068_v24 = vld [vmem:[%s5793_s6 + $0xb] ss:$0 sm:$0xff] }
 0xc0e   :  { %4855 = vmatpush3.bf16.msra.mxu1 %v4854_v8 }
 0xc0f   :  { %4614 = vmatprep.subr.msk.mxu1 %vm528_vm2, %v5577_v17 }
 0xc11   :  { %4605 = vmatmul.mubr.msk.f32.vlgmr.msra.gmra.mrb[30].mxu1 %vm60_vm0, %v5002_v9 }
 0xc12   :  { %4616 = vmatprep.mubr.msk.f32.mxu1 %vm528_vm2, %v5562_v55  ;;  %v4072_v55 = vld [vmem:[%s5793_s6 + $0xf] ss:$0 sm:$0xff] }
 0xc17   :  { %4615 = vmatpush3.xpose.msk.msra.mxu1 %vm528_vm2, %v5577_v17 }
 0xc1a   :  { %4617 = vmatmul.mubr.msk.f32.vlgmr.msra.gmra.mrb[32].mxu1 %vm528_vm2, %v5573_v15 }
 0xcdc   :  { %v4584_v31 = vpop.f32.mrb[28].mxu1 }
 0xcdd   :  { %v3012_v49 = vadd.f32 %v4584_v31, %v4068_v24  ;;  %v3006_v10 = vpop.f32.mrb[29].mxu1 }
 0xcde   :  { %v3007_v11 = vadd.f32 %v4068_v24, %v3006_v10 }
 0xce0   :  { %v5644_v12 = vpack.c.bf16 %v3012_v49, %v3007_v11 }
 0xce4   :  { %v3157_v13 = vpop.f32.mrb[30].mxu1 }
 0xce5   :  { %v3158_v16 = vadd.f32 %v4072_v55, %v3157_v13  ;;  %v4606_v17 = vpop.f32.mrb[31].mxu1 }
 0xce7   :  { %4619 = vmatprep.subr.msk.mxu1 %vm748_vm4, %v3158_v16 }
 0xce8   :  { %4620 = vmatpush3.msk.msra.mxu1 %vm748_vm4, %v3158_v16 }
 0xce9   :  { %4863 = vmatprep.subr.bf16.mxu1 %v5644_v12 }
 0xced   :  { %v4618_v15 = vpop.f32.mrb[32].mxu1 }
 0xcee   :  { %v3341_v18 = vpop.f32.mrb[33].mxu1  ;;  %v3353_v19 = vsel %vm719_vm5, %v4618_v15, -inf }
 0xcef   :  { %3354 = vmax.xlane.f32.xlu1 %v3353_v19  ;;  %v3350_v48 = vsel %vm719_vm5, %v3341_v18, -inf }
 0xcf0   :  { %3351 = vmax.xlane.f32.xlu0 %v3350_v48  ;;  %v3680_v48 = vld [vmem:[%s5798_s11 + $0x18] sm:$0xff] }
 0xcf3   :  { %3254 = vmax.xlane.f32.xlu1 %v3253_v22  ;;  %v3787_v22 = vld [vmem:[%s5800_s13] sm:$0xff] }
 0xcf4   :  { %3251 = vmax.xlane.f32.xlu0 %v3250_v23  ;;  %v3788_v23 = vld [vmem:[%s5800_s13 + $0x8] sm:$0xff] }
 0xd7c   :  { %v3355_v25 = vpop.xlane.xlu1 %3354 }
 0xd7d   :  { %v3357_v26 = vsub.f32 %v4618_v15, %v3355_v25  ;;  %v3352_v5 = vpop.xlane.xlu0 %3351  ;;  %v3677_v15 = vld [vmem:[%s5798_s11] sm:$0xff]  ;;  %v4874_v25 = vpack.c.bf16 %v3788_v23, %v3787_v22 }
 0xd7e   :  { %v3356_v27 = vsub.f32 %v3341_v18, %v3352_v5  ;;  %v3678_v18 = vld [vmem:[%s5798_s11 + $0x8] sm:$0xff]  ;;  %v4095_v23 = vld [vmem:[%s5801_s14] ss:$0 sm:$0xff] }
 0xd7f   :  { %v3360_v41 = vmul.f32 1.442695, %v3357_v26  ;;  %v4866_v19 = vpack.c.bf16 %v3678_v18, %v3677_v15 }
 0xd80   :  { %v3358_v28 = vmul.f32 1.442695, %v3356_v27  ;;  %v3255_v29 = vpop.xlane.xlu1 %3254 }
 0xd81   :  { %4978 = vpow2.f32 %v3360_v41  ;;  %v3257_v32 = vsub.f32 %v3249_v20, %v3255_v29  ;;  %v3252_v33 = vpop.xlane.xlu0 %3251  ;;  %v3679_v20 = vld [vmem:[%s5798_s11 + $0x10] sm:$0xff]  ;;  %4867 = vmatprep.subr.bf16.mxu0 %v4866_v19 }
 0xd82   :  { %4980 = vpow2.f32 %v3358_v28  ;;  %v3256_v42 = vsub.f32 %v3248_v21, %v3252_v33  ;;  %v4870_v21 = vpack.c.bf16 %v3680_v48, %v3679_v20  ;;  %4869 = vmatpush3.bf16.msra.mxu0 %v4866_v19  ;;  %v4090_v33 = vld [vmem:[%s5796_s9] ss:$0 sm:$0xff] }
 0xd83   :  { %v3260_v34 = vmul.f32 1.442695, %v3257_v32 }
 0xd84   :  { %v3258_v35 = vmul.f32 1.442695, %v3256_v42  ;;  %4871 = vmatprep.subr.bf16.mxu0 %v4870_v21 }
 0xd85   :  { %4982 = vpow2.f32 %v3260_v34 }
 0xd86   :  { %4984 = vpow2.f32 %v3258_v35  ;;  %4873 = vmatpush3.bf16.msra.mxu0 %v4870_v21 }
 0xd87   :  { %4875 = vmatprep.subr.bf16.mxu0 %v4874_v25 }
 0xd8b   :  { %v4979_v36 = vpop.eup %4978 }
 0xd8c   :  { %v4981_v37 = vpop.eup %4980  ;;  %v3365_v38 = vsel %vm719_vm5, %v4979_v36, 0.0 }
 0xd8d   :  { %3366 = vadd.xlane.f32.xlu1 %v3365_v38  ;;  %v3362_v39 = vsel %vm719_vm5, %v4981_v37, 0.0 }
 0xd8e   :  { %3363 = vadd.xlane.f32.xlu0 %v3362_v39 }
 0xd8f   :  { %v4983_v40 = vpop.eup %4982 }
 0xd90   :  { %v4985_v43 = vpop.eup %4984  ;;  %v3265_v45 = vsel %vm618_vm8, %v4983_v40, 0.0 }
 0xd91   :  { %3266 = vadd.xlane.f32.xlu1 %v3265_v45  ;;  %v3262_v14 = vsel %vm618_vm8, %v4985_v43, 0.0  ;;  %v3790_v45 = vld [vmem:[%s5800_s13 + $0x18] sm:$0xff] }
 0xd92   :  { %3263 = vadd.xlane.f32.xlu0 %v3262_v14 }
 0xe1a   :  { %v3367_v46 = vpop.xlane.xlu1 %3366 }
 0xe1b   :  { %4986 = vrcp.f32 %v3367_v46  ;;  %v3364_v50 = vpop.xlane.xlu0 %3363  ;;  %v3791_v46 = vld [vmem:[%s5800_s13 + $0x20] sm:$0xff] }
 0xe1c   :  { %4988 = vrcp.f32 %v3364_v50  ;;  %v3792_v50 = vld [vmem:[%s5800_s13 + $0x28] sm:$0xff] }
 0xe1e   :  { %v3267_v52 = vpop.xlane.xlu1 %3266 }
 0xe1f   :  { %v3264_v51 = vpop.xlane.xlu0 %3263 }
 0xe20   :  { %4990 = vrcp.f32 %v3264_v51  ;;  %v4882_v51 = vpack.c.bf16 %v3792_v50, %v3791_v46 }
 0xe21   :  { %4992 = vrcp.f32 %v3267_v52  ;;  %v3793_v52 = vld [vmem:[%s5800_s13 + $0x30] sm:$0xff] }
 0xe25   :  { %v4987_v53 = vpop.eup %4986 }
 0xe26   :  { %v4989_v54 = vpop.eup %4988  ;;  %v3371_v57 = vmul.f32 %v4987_v53, %v4979_v36  ;;  %v4091_v36 = vld [vmem:[%s5797_s10] ss:$0 sm:$0xff]  ;;  %v3794_v53 = vld [vmem:[%s5800_s13 + $0x38] sm:$0xff]  ;;  %s3894_s10 = sshll.u32 %s5032_s24, 4  ;;  %s3895_s10 = int_to_ptr.vmem [resolvable:$true] %s3894_s10 }
 0xe27   :  { %v3369_v56 = vmul.f32 %v4989_v54, %v4981_v37  ;;  %v4886_v54 = vpack.c.bf16 %v3794_v53, %v3793_v52  ;;  %s5005_s7 = scalar_lea.vmem %s3895_s10, 256  ;;  %p5010_p1 = scmp.lt.s32.totalorder %s3895_s10, %s3895_s10 }
 0xe28   :  { %p5006_p0 = scmp.ne.s32.totalorder %s3895_s10, %s5005_s7  ;;  %p5011_p2 = scmp.lt.s32.totalorder %s5005_s7, %s5005_s7 }
 0xe29   :  { %4621 = vmatprep.mubr.msk.f32.mxu1 %vm719_vm5, %v3369_v56  ;;  %v3795_v56 = vld [vmem:[%s5800_s13 + $0x40] sm:$0xff] }
 0xe2a   :  { %v4991_v63 = vpop.eup %4990  ;;  %4622 = vmatmul.mubr.msk.f32.vlgmr.msra.gmra.mrb[34].mxu1 %vm719_vm5, %v3371_v57  ;;  %v3796_v57 = vld [vmem:[%s5800_s13 + $0x48] sm:$0xff]  ;;  %p5012_p3 = por %p5011_p2, %p5010_p1 }
 0xe2b   :  { %4865 = vmatpush3.bf16.msra.mxu1 %v5644_v12  ;;  %v3269_v59 = vmul.f32 %v4991_v63, %v4985_v43  ;;  %v4993_v60 = vpop.eup %4992  ;;  %v3789_v43 = vld [vmem:[%s5800_s13 + $0x10] sm:$0xff] }
 0xe2c   :  { %4631 = vmatprep.subr.mxu1 %v4086_v58  ;;  %v3271_v61 = vmul.f32 %v4993_v60, %v4983_v40  ;;  %v4878_v14 = vpack.c.bf16 %v3790_v45, %v3789_v43  ;;  %v3797_v63 = vld [vmem:[%s5800_s13 + $0x50] sm:$0xff]  ;;  %p5013_p4 = pnand %p5012_p3, %p5006_p0 }
 0xe2d   :  { %4628 = vmatprep.mubr.msk.f32.mxu1 %vm618_vm8, %v3269_v59  ;;  %v3798_v59 = vld [vmem:[%s5800_s13 + $0x58] sm:$0xff] }
 0xe2e   :  { %v4894_v60 = vpack.c.bf16 %v3798_v59, %v3797_v63 }
 0xe32   :  { %4629 = vmatmul.mubr.msk.f32.vlgmr.msra.gmra.mrb[34].mxu1 %vm618_vm8, %v3271_v61  ;;  %v3799_v61 = vld [vmem:[%s5800_s13 + $0x60] sm:$0xff] }
 0xe33   :  { %4632 = vmatpush3.msra.mxu1 %v4086_v58  ;;  %v4890_v58 = vpack.c.bf16 %v3796_v57, %v3795_v56 }
 0xf05   :  { %v4630_v62 = vpop.f32.mrb[34].mxu1 }
 0xf06   :  { %v3528_v47 = vpop.f32.mrb[35].mxu1 }
 0xf07   :  { %4633 = vmatprep.mubr.msk.f32.mxu1 %vm528_vm2, %v3528_v47 }
 0xf08   :  { %4634 = vmatmul.mubr.msk.f32.vlgmr.msra.gmra.mrb[18].mxu1 %vm528_vm2, %v4630_v62  ;;  %v3800_v62 = vld [vmem:[%s5800_s13 + $0x68] sm:$0xff] }
 0xf09   :  { %v4898_v47 = vpack.c.bf16 %v3800_v62, %v3799_v61 }
 0xfdb   :  { %v4635_v1 = vpop.f32.mrb[18].mxu1 }
 0xfdc   :  { %v3630_v2 = vadd.f32 %v4635_v1, %v4089_v0  ;;  %v3611_v3 = vpop.f32.mrb[19].mxu1  ;;  %v3802_v1 = vld [vmem:[%s5800_s13 + $0x78] sm:$0xff] }
 0xfdd   :  { %v3629_v30 = vadd.f32 %v4089_v0, %v3611_v3  ;;  %v3801_v0 = vld [vmem:[%s5800_s13 + $0x70] sm:$0xff]  ;;  %v4092_v3 = vld [vmem:[%s5799_s12] ss:$0 sm:$0xff] }
 0xfde   :  { %v5682_v6 = vadd.f32 %v5003_v4, %v3630_v2  ;;  %v4902_v2 = vpack.c.bf16 %v3802_v1, %v3801_v0 }
 0xfdf   :  { %v5687_v44 = vadd.f32 %v5004_v7, %v3629_v30 }
 0xfe0   :  { %v3638_v8 = vsel %vm60_vm0, %v5682_v6, 0.0 }
 0xfe1   :  { %3639 = vadd.xlane.f32.xlu1 %v3638_v8  ;;  %v3635_v9 = vsel %vm60_vm0, %v5687_v44, 0.0 }
 0xfe2   :  { %3636 = vadd.xlane.f32.xlu0 %v3635_v9 }
0x106e   :  { %v3640_v24 = vpop.xlane.xlu1 %3639 }
0x106f   :  { %v3642_v31 = vmul.f32 0.03125, %v3640_v24  ;;  %v3637_v49 = vpop.xlane.xlu0 %3636 }
0x1070   :  { %v3641_v10 = vmul.f32 0.03125, %v3637_v49 }
0x1071   :  { %v3644_v11 = vsub.f32 %v5682_v6, %v3642_v31 }
0x1072   :  { %v3643_v12 = vsub.f32 %v5687_v44, %v3641_v10 }
0x1073   :  { %v3646_v55 = vmul.f32 %v3644_v11, %v3644_v11 }
0x1074   :  { %v3645_v13 = vmul.f32 %v3643_v12, %v3643_v12 }
0x1075   :  { %v3650_v16 = vsel %vm60_vm0, %v3646_v55, 0.0 }
0x1076   :  { %3651 = vadd.xlane.f32.xlu1 %v3650_v16  ;;  %v3647_v17 = vsel %vm60_vm0, %v3645_v13, 0.0 }
0x1077   :  { %3648 = vadd.xlane.f32.xlu0 %v3647_v17 }
0x1103   :  { %v3652_v26 = vpop.xlane.xlu1 %3651 }
0x1104   :  { %v3654_v5 = vmul.f32 0.03125, %v3652_v26  ;;  %v3649_v27 = vpop.xlane.xlu0 %3648 }
0x1105   :  { %v3653_v41 = vmul.f32 0.03125, %v3649_v27 }
0x1106   :  { %v3656_v28 = vadd.f32 1e-05, %v3654_v5 }
0x1107   :  { %v3655_v29 = vadd.f32 1e-05, %v3653_v41 }
0x1108   :  { %4994 = vrsqrt.f32 %v3656_v28 }
0x1109   :  { %4996 = vrsqrt.f32 %v3655_v29 }
0x1112   :  { %v4995_v32 = vpop.eup %4994 }
0x1113   :  { %v4997_v42 = vpop.eup %4996  ;;  %v3660_v34 = vmul.f32 %v4995_v32, %v3644_v11 }
0x1114   :  { %v3659_v35 = vmul.f32 %v4997_v42, %v3643_v12 }
0x1115   :  { %v3668_v37 = vmul.f32 %v4090_v33, %v3660_v34 }
0x1116   :  { %v3667_v38 = vmul.f32 %v4090_v33, %v3659_v35 }
0x1117   :  { %v3676_v40 = vadd.f32 %v4091_v36, %v3668_v37 }
0x1118   :  { %v3675_v39 = vadd.f32 %v4091_v36, %v3667_v38 }
0x111a   :  { %4644 = vmatprep.mubr.msk.f32.mxu0 %vm60_vm0, %v3675_v39 }
0x111b   :  { %4645 = vmatmul.mubr.msk.f32.vlgmr.msra.gmra.mrb[30].mxu0 %vm60_vm0, %v3676_v40 }
0x111c   :  { %4877 = vmatpush3.bf16.msra.mxu0 %v4874_v25 }
0x111d   :  { %4879 = vmatprep.subr.bf16.mxu0 %v4878_v14 }
0x1120   :  { %4881 = vmatpush3.bf16.msra.mxu0 %v4878_v14 }
0x1121   :  { %4883 = vmatprep.subr.bf16.mxu0 %v4882_v51 }
0x1124   :  { %4885 = vmatpush3.bf16.msra.mxu0 %v4882_v51 }
0x1125   :  { %4887 = vmatprep.subr.bf16.mxu0 %v4886_v54 }
0x1128   :  { %4889 = vmatpush3.bf16.msra.mxu0 %v4886_v54 }
0x1129   :  { %4891 = vmatprep.subr.bf16.mxu0 %v4890_v58 }
0x112c   :  { %4893 = vmatpush3.bf16.msra.mxu0 %v4890_v58 }
0x112d   :  { %4895 = vmatprep.subr.bf16.mxu0 %v4894_v60 }
0x1130   :  { %4897 = vmatpush3.bf16.msra.mxu0 %v4894_v60 }
0x1131   :  { %4899 = vmatprep.subr.bf16.mxu0 %v4898_v47 }
0x1134   :  { %4901 = vmatpush3.bf16.msra.mxu0 %v4898_v47 }
0x1135   :  { %4903 = vmatprep.subr.bf16.mxu0 %v4902_v2 }
0x1138   :  { %4905 = vmatpush3.bf16.msra.mxu0 %v4902_v2 }
0x11ee   :  { %v4646_v30 = vpop.f32.mrb[30].mxu0 }
0x11ef   :  { %v3766_v4 = vadd.f32 %v4646_v30, %v4092_v3  ;;  %v3760_v7 = vpop.f32.mrb[31].mxu0 }
0x11f0   :  { %v3761_v8 = vadd.f32 %v4092_v3, %v3760_v7 }
0x11f1   :  { %v3772_v9 = vmul.f32 0.044715, %v3766_v4  ;;  %v3770_v48 = vmul.f32 0.5, %v3766_v4 }
0x11f2   :  { %v3771_v24 = vmul.f32 0.044715, %v3761_v8  ;;  %v3769_v19 = vmul.f32 0.5, %v3761_v8 }
0x11f3   :  { %v3774_v31 = vmul.f32 %v3772_v9, %v3766_v4 }
0x11f4   :  { %v3773_v49 = vmul.f32 %v3771_v24, %v3761_v8 }
0x11f5   :  { %v3776_v10 = vmul.f32 %v3774_v31, %v3766_v4 }
0x11f6   :  { %v3775_v11 = vmul.f32 %v3773_v49, %v3761_v8 }
0x11f7   :  { %v3778_v12 = vadd.f32 %v3776_v10, %v3766_v4 }
0x11f8   :  { %v3777_v55 = vadd.f32 %v3775_v11, %v3761_v8 }
0x11f9   :  { %v3780_v13 = vmul.f32 0.7978846, %v3778_v12 }
0x11fa   :  { %v3779_v16 = vmul.f32 0.7978846, %v3777_v55 }
0x11fb   :  { %4998 = vtanh.f32 %v3780_v13 }
0x11fc   :  { %5000 = vtanh.f32 %v3779_v16 }
0x1205   :  { %v4999_v17 = vpop.eup %4998 }
0x1206   :  { %v5001_v15 = vpop.eup %5000  ;;  %v3784_v18 = vadd.f32 1.0, %v4999_v17 }
0x1207   :  { %v3783_v20 = vadd.f32 1.0, %v5001_v15 }
0x1208   :  { %v3786_v22 = vmul.f32 %v3784_v18, %v3770_v48 }
0x1209   :  { %v3785_v21 = vmul.f32 %v3783_v20, %v3769_v19 }
0x120b   :  { %4679 = vmatprep.mubr.f32.mxu0 %v3785_v21 }
0x120c   :  { %4680 = vmatmul.mubr.f32.vlgmr.msra.gmra.mrb[32].mxu0 %v3786_v22 }
0x12df   :  { %v4681_v25 = vpop.f32.mrb[32].mxu0 }
0x12e0   :  { %v3882_v26 = vadd.f32 %v4681_v25, %v4095_v23  ;;  %v3876_v5 = vpop.f32.mrb[33].mxu0 }
0x12e1   :  { %v3877_v27 = vadd.f32 %v4095_v23, %v3876_v5 }
0x12e2   :  { %v3886_v41 = vadd.f32 %v3882_v26, %v5682_v6 }
0x12e3   :  { %v3885_v28 = vadd.f32 %v3877_v27, %v5687_v44 }
0x12e4   :  { %3888 = vst.msk [vmem:[#allocation2 + $0x8] sm:$0xff] %vm60_vm0, %v3886_v41 }
0x12e5   :  { %3887 = vst.msk [vmem:[#allocation2] sm:$0xff] %vm60_vm0, %v3885_v28 }
0x12e6   :  { %5016 = shalt.err (!%p5013_p4)
}
0x12e7   :  { %s5017_s26 = scalar_lea.hbm %s5802_s15, 256 }
0x12e8   :  { %p5018_p5 = scmp.ne.s32.totalorder %s5802_s15, %s5017_s26  ;;  %p5021_p6 = scmp.lt.u32.totalorder %s5017_s26, %s5802_s15 }
0x12ea   :  { %p5023_p7 = pnand %p5021_p6, %p5018_p5 }
0x12ec   :  { %5026 = shalt.err (!%p5023_p7)
}
0x12ed   :  { %s5033_s8 = smov 128   ;;  %s5034_s2 = smov 8  }
0x12ee   :  { %3900 = dma.vmem_to_hbm [thread:$0]  %s3895_s10, 256, %s5802_s15, [#allocation3], %s5033_s8, %s5033_s8, %s5034_s2  }
0x12ef   :  { %5027 = dma.done.wait [#allocation3], 256  }
0x12f0   :  { %5028 = vsyncadd [#allocation3], 4294967040 }
0x12f1   :  { %3904 = vsyncpa [#allocation3], 1 }

</bundles_post_ra>
